<compile_context>
chip_gen: v5e
topology: v5e:2x2
jax: 0.10.0
libtpu: 0.0.40
codegen_flags: <defaults>
</compile_context>

<pallas_src>
import jax
import jax.numpy as jnp
import numpy as np
from jax import lax
from jax.experimental import pallas as pl
from jax.experimental.pallas import tpu as pltpu

# ---------------- config (mirrors `conf` of the PyTorch module) ----------------
CHAR_NUM = 20                      # conf.char_num
CHAR_EMBED_DIM = 8                 # conf.char_embed_dim  (E)
CHAR_ENC_DIM = 16                  # conf.char_enc_dim    (C per filter)
CHAR_FILTER_DIM = (3, 5)           # conf.char_filter_dim
CHAR_FILTER_NUM = len(CHAR_FILTER_DIM)
CHAR_HID_DIM = CHAR_FILTER_NUM * CHAR_ENC_DIM   # conf.char_hid_dim (H = 32)
CHAR_PADDING_IDX = 0               # conf.char_padding_idx
VOCAB = 12                         # lookup.size(0)  (word vocab)
MAX_CHARS = 8                      # lookup.size(1)  (chars per word, L)

GROUP = 4                          # tokens packed per lane-dense row (4*H = 128)
KPAD = 128                         # conv contraction depth per token (W*V=100 -> 128)


# ------------------------------- Pallas kernel ---------------------------------
def make_char_kernel(L, W, G, H):
    """Token-packed, lane-dense fused conv + tanh + maxpool + highway + mask."""
    GK = G * KPAD        # 512
    GH = G * H           # 128

    def kernel(idx_ref, mask_ref, wconv_ref, bconv_ref, whi_ref, bhi_ref,
               wgt_ref, bgt_ref, out_ref):
        idx = idx_ref[...]                                     # (Rt, L, G*W) int32
        Rt = idx.shape[0]

        # lane-dense one-hot im2col: W compares per token-group against one iota
        iota = lax.broadcasted_iota(jnp.int32, (Rt, L, KPAD), 2)
        groups = []
        for g in range(G):
            acc = None
            for d in range(W):
                c = g * W + d
                hit = idx[:, :, c:c + 1] == iota               # (Rt, L, 128) bool
                acc = hit if acc is None else jnp.logical_or(acc, hit)
            groups.append(acc.astype(jnp.float32))
        onehot = jnp.concatenate(groups, axis=2)               # (Rt, L, 512), 128-aligned
        lhs = onehot.reshape(Rt * L, GK)                       # layout-free collapse

        # ONE MXU matmul: block-diagonal embed∘conv, output 128-lane dense
        pre = jnp.dot(lhs, wconv_ref[...], preferred_element_type=jnp.float32)
        act = jnp.tanh(pre + bconv_ref[...])                   # (Rt*L, 128)
        hid = jnp.max(act.reshape(Rt, L, GH), axis=1)          # sublane maxpool -> (Rt, 128)

        # Highway (block-diagonal, lane-dense): y = x@W.T + b per packed token
        hi = jnp.dot(hid, whi_ref[...], preferred_element_type=jnp.float32) + bhi_ref[...]
        gt = jnp.dot(hid, wgt_ref[...], preferred_element_type=jnp.float32) + bgt_ref[...]
        m = jnp.maximum(hi, 0.0)
        gate = jax.nn.sigmoid(gt)
        out = gate * m + (1.0 - gate) * hid

        out_ref[...] = (out * mask_ref[...]).astype(out_ref.dtype)   # exact per-dim mask

    return kernel


# --------------------------------- wrapper --------------------------------------
def char_layer_forward(word_ids, params, *, tile_n=1024):
    B, T = word_ids.shape
    N = B * T
    L, H, V, C, G = MAX_CHARS, CHAR_HID_DIM, CHAR_NUM, CHAR_ENC_DIM, GROUP

    # ---- static conv-window geometry (handles odd & even filter widths) ----
    offs = [1 if k % 2 == 0 else 0 for k in CHAR_FILTER_DIM]   # PyTorch drops 1st col, even k
    pads = [k // 2 for k in CHAR_FILTER_DIM]
    left = max(p - o for p, o in zip(pads, offs))
    right = max(k - 1 - p + o for k, p, o in zip(CHAR_FILTER_DIM, pads, offs))
    W = left + right + 1                                       # = 5 here
    assert W * V <= KPAD

    # ---- glue (plain JAX): word->char indices, shifted window indices, mask ----
    flat = word_ids.reshape(-1)
    charseq = params['lookup'][flat].astype(jnp.int32)                       # (N, L)
    charseq = jnp.pad(charseq, ((0, 0), (left, right)), constant_values=-1)  # (N, L+W-1)
    wins = jnp.stack([charseq[:, d:d + L] for d in range(W)], axis=2)        # (N, L, W)
    band = (jnp.arange(W, dtype=jnp.int32) * V)[None, None, :]
    idx = jnp.where(wins >= 0, wins + band, -1)                              # (N, L, W)
    maskfull = params['mask_table'][flat].astype(jnp.float32)                # (N, H)

    # ---- fold char embedding into the conv weights: (W*V, H), K padded to 128 ----
    wcomb = jnp.zeros((W, V, H), jnp.float32)
    for f, k in enumerate(CHAR_FILTER_DIM):
        # tap[v, j, c] = sum_e embed[v, e] * conv_w[f][c, e, j]
        tap = jnp.einsum('ve,cek->vkc', params['char_embed'], params['conv_w'][f])
        for j in range(k):
            d = j - pads[f] + offs[f] + left
            wcomb = wcomb.at[d, :, f * C:(f + 1) * C].add(tap[:, j, :])
    wcomb = wcomb.reshape(W * V, H)
    wcomb128 = jnp.zeros((KPAD, H), jnp.float32).at[:W * V].set(wcomb)       # (128, 32)
    bconv = jnp.concatenate([params['conv_b'][f] for f in range(CHAR_FILTER_NUM)])

    # ---- block-diagonal packing (4 tokens per lane-dense row) ----
    eye = jnp.eye(G, dtype=jnp.float32)
    wconv_pack = jnp.kron(eye, wcomb128)                     # (512, 128)
    whi_pack = jnp.kron(eye, params['highway_w'].T)          # (128, 128)
    wgt_pack = jnp.kron(eye, params['gate_w'].T)             # (128, 128)
    bconv_pack = jnp.tile(bconv.reshape(1, H), (1, G))       # (1, 128)
    bhi_pack = jnp.tile(params['highway_b'].reshape(1, H), (1, G))
    bgt_pack = jnp.tile(params['gate_b'].reshape(1, H), (1, G))

    # ---- tiling: tile_n multiple of 32; aim for >=4 grid steps (v7x dual-TC) ----
    req = max(32, (int(tile_n) // 32) * 32)
    auto = ((-(-N // 4)) + 31) // 32 * 32                    # round_up(cdiv(N,4), 32)
    tile_n = max(32, min(req, auto))
    Np = ((N + tile_n - 1) // tile_n) * tile_n
    if Np != N:
        idx = jnp.pad(idx, ((0, Np - N), (0, 0), (0, 0)), constant_values=-1)
        maskfull = jnp.pad(maskfull, ((0, Np - N), (0, 0)))
    R_total = Np // G
    Rt = tile_n // G

    # token-pack: (Np, L, W) -> (Np/4, L, 4*W), column = g*W + d;  mask -> (Np/4, 128)
    idx_p = jnp.transpose(idx.reshape(R_total, G, L, W), (0, 2, 1, 3)).reshape(R_total, L, G * W)
    mask_p = maskfull.reshape(R_total, G * H)

    grid = (Np // tile_n,)
    kernel = make_char_kernel(L=L, W=W, G=G, H=H)

    outp = pl.pallas_call(
        kernel,
        out_shape=jax.ShapeDtypeStruct((R_total, G * H), jnp.float32),
        grid=grid,
        in_specs=[
            pl.BlockSpec((Rt, L, G * W), lambda i: (i, 0, 0)),   # window indices
            pl.BlockSpec((Rt, G * H), lambda i: (i, 0)),         # packed per-dim mask
            pl.BlockSpec((G * KPAD, G * H), lambda i: (0, 0)),   # block-diag embed∘conv
            pl.BlockSpec((1, G * H), lambda i: (0, 0)),          # conv bias (tiled x4)
            pl.BlockSpec((G * H, G * H), lambda i: (0, 0)),      # block-diag highway W
            pl.BlockSpec((1, G * H), lambda i: (0, 0)),          # highway bias (tiled)
            pl.BlockSpec((G * H, G * H), lambda i: (0, 0)),      # block-diag gate W
            pl.BlockSpec((1, G * H), lambda i: (0, 0)),          # gate bias (tiled)
        ],
        out_specs=pl.BlockSpec((Rt, G * H), lambda i: (i, 0)),   # lane-dense store
        compiler_params=pltpu.CompilerParams(
            dimension_semantics=("parallel",),
            vmem_limit_bytes=32 * 1024 * 1024),
    )(idx_p, mask_p, wconv_pack, bconv_pack, whi_pack, bhi_pack, wgt_pack, bgt_pack)

    return outp.reshape(Np, H)[:N].reshape(B, T, H)


# ------------------------- pure-JAX reference (for checking) --------------------
def reference_forward(word_ids, params):
    B, T = word_ids.shape
    flat = word_ids.reshape(-1)
    charseq = params['lookup'][flat]
    emb = params['char_embed'][charseq]                 # (N, L, E)
    x = jnp.transpose(emb, (0, 2, 1))                   # (N, E, L)  == PyTorch NCL
    feats = []
    for f, k in enumerate(CHAR_FILTER_DIM):
        w = params['conv_w'][f]                         # (C, E, k)  == OIH
        b = params['conv_b'][f]
        y = lax.conv_general_dilated(x, w, (1,), [(k // 2, k // 2)],
                                     dimension_numbers=('NCH', 'OIH', 'NCH'))
        y = jnp.tanh(y + b.reshape(1, -1, 1))
        if y.shape[2] > x.shape[2]:
            y = y[:, :, 1:]
        feats.append(jnp.max(y, axis=2))
    hid = jnp.concatenate(feats, axis=1)
    gate = jax.nn.sigmoid(hid @ params['gate_w'].T + params['gate_b'])
    m = jnp.maximum(hid @ params['highway_w'].T + params['highway_b'], 0.0)
    out = gate * m + (1.0 - gate) * hid
    mask = params['mask_table'][flat]
    return (out * mask).reshape(B, T, CHAR_HID_DIM)


# ---------------------------- deterministic init --------------------------------
def init_params(key):
    keys = jax.random.split(key, 6 + 2 * CHAR_FILTER_NUM)

    lookup = jax.random.randint(keys[0], (VOCAB, MAX_CHARS), 0, CHAR_NUM, dtype=jnp.int32)
    lookup = lookup.at[:2].set(CHAR_PADDING_IDX)        # words 0/1 -> padding chars

    char_embed = 0.1 * jax.random.normal(keys[1], (CHAR_NUM, CHAR_EMBED_DIM), jnp.float32)
    char_embed = char_embed.at[CHAR_PADDING_IDX].set(0.0)   # nn.Embedding padding_idx

    conv_w, conv_b = [], []
    for f, k in enumerate(CHAR_FILTER_DIM):
        fan_in, fan_out = CHAR_EMBED_DIM * k, CHAR_ENC_DIM * k
        limit = float(np.sqrt(6.0 / (fan_in + fan_out)))     # xavier_uniform_
        conv_w.append(jax.random.uniform(keys[2 + 2 * f],
                                         (CHAR_ENC_DIM, CHAR_EMBED_DIM, k),
                                         jnp.float32, -limit, limit))
        bb = 1.0 / float(np.sqrt(fan_in))
        conv_b.append(jax.random.uniform(keys[3 + 2 * f], (CHAR_ENC_DIM,),
                                         jnp.float32, -bb, bb))

    H = CHAR_HID_DIM
    lim = 1.0 / float(np.sqrt(H))
    k0 = 2 + 2 * CHAR_FILTER_NUM
    highway_w = jax.random.uniform(keys[k0], (H, H), jnp.float32, -lim, lim)
    highway_b = jax.random.uniform(keys[k0 + 1], (H,), jnp.float32, -lim, lim)
    gate_w = jax.random.uniform(keys[k0 + 2], (H, H), jnp.float32, -lim, lim)
    gate_b = jax.random.uniform(keys[k0 + 3], (H,), jnp.float32, -lim, lim)

    mask_table = jnp.ones((VOCAB, H), jnp.float32).at[:2].set(0.0)  # rows 0,1 -> 0

    return dict(lookup=lookup, char_embed=char_embed, conv_w=conv_w, conv_b=conv_b,
                highway_w=highway_w, highway_b=highway_b,
                gate_w=gate_w, gate_b=gate_b, mask_table=mask_table)


if __name__ == "__main__":
    key = jax.random.PRNGKey(0)
    pkey, ikey, ikey2 = jax.random.split(key, 3)
    params = init_params(pkey)

    # primary small case (module-consistent shapes)
    B, T = 2, 8
    word_ids = jax.random.randint(ikey, (B, T), 0, VOCAB, dtype=jnp.int32)
    out = jax.block_until_ready(char_layer_forward(word_ids, params))
    assert out.shape == (B, T, CHAR_HID_DIM)
    ref = reference_forward(word_ids, params)
    np.testing.assert_allclose(np.asarray(out), np.asarray(ref), rtol=1e-4, atol=1e-4)

    # second case: exercises multi-step grid + ragged-tail padding path
    B2, T2 = 3, 50
    word_ids2 = jax.random.randint(ikey2, (B2, T2), 0, VOCAB, dtype=jnp.int32)
    out2 = jax.block_until_ready(char_layer_forward(word_ids2, params, tile_n=64))
    ref2 = reference_forward(word_ids2, params)
    np.testing.assert_allclose(np.asarray(out2), np.asarray(ref2), rtol=1e-4, atol=1e-4)

    print("KERNEL_OK")
</pallas_src>

<mosaic_0001>
module attributes {stable_mosaic.version = 11 : i64} {
  func.func @kernel(%arg0: i32, %arg1: memref<8x8x20xi32, #tpu.memory_space<vmem>>, %arg2: memref<8x128xf32, #tpu.memory_space<vmem>>, %arg3: memref<512x128xf32, #tpu.memory_space<vmem>>, %arg4: memref<1x128xf32, #tpu.memory_space<vmem>>, %arg5: memref<128x128xf32, #tpu.memory_space<vmem>>, %arg6: memref<1x128xf32, #tpu.memory_space<vmem>>, %arg7: memref<128x128xf32, #tpu.memory_space<vmem>>, %arg8: memref<1x128xf32, #tpu.memory_space<vmem>>, %arg9: memref<8x128xf32, #tpu.memory_space<vmem>>) attributes {dimension_semantics = [#tpu.dimension_semantics<parallel>], iteration_bounds = array<i64: 1>, scalar_prefetch = 0 : i64, scratch_operands = 0 : i64, tpu.core_type = #tpu.core_type<tc>, window_params = [{transform_indices = @transform_0, window_bounds = array<i64: 8, 8, 20>}, {transform_indices = @transform_1, window_bounds = array<i64: 8, 128>}, {pipeline_mode = #tpu.pipeline_mode<synchronous>, transform_indices = @transform_2, window_bounds = array<i64: 512, 128>}, {pipeline_mode = #tpu.pipeline_mode<synchronous>, transform_indices = @transform_3, window_bounds = array<i64: 1, 128>}, {pipeline_mode = #tpu.pipeline_mode<synchronous>, transform_indices = @transform_4, window_bounds = array<i64: 128, 128>}, {pipeline_mode = #tpu.pipeline_mode<synchronous>, transform_indices = @transform_5, window_bounds = array<i64: 1, 128>}, {pipeline_mode = #tpu.pipeline_mode<synchronous>, transform_indices = @transform_6, window_bounds = array<i64: 128, 128>}, {pipeline_mode = #tpu.pipeline_mode<synchronous>, transform_indices = @transform_7, window_bounds = array<i64: 1, 128>}, {transform_indices = @transform_8, window_bounds = array<i64: 8, 128>}]} {
    %c0 = arith.constant 0 : index
    %c0_0 = arith.constant 0 : index
    %c0_1 = arith.constant 0 : index
    %0 = vector.load %arg1[%c0, %c0_0, %c0_1] : memref<8x8x20xi32, #tpu.memory_space<vmem>>, vector<8x8x20xi32>
    %1 = tpu.iota {dimensions = array<i32: 2>} : vector<8x8x128xi32>
    %2 = vector.extract_strided_slice %0 {offsets = [0, 0, 0], sizes = [8, 8, 1], strides = [1, 1, 1]} : vector<8x8x20xi32> to vector<8x8x1xi32>
    %3 = vector.broadcast %2 : vector<8x8x1xi32> to vector<8x8x128xi32>
    %4 = arith.cmpi eq, %3, %1 : vector<8x8x128xi32>
    %5 = vector.extract_strided_slice %0 {offsets = [0, 0, 1], sizes = [8, 8, 1], strides = [1, 1, 1]} : vector<8x8x20xi32> to vector<8x8x1xi32>
    %6 = vector.broadcast %5 : vector<8x8x1xi32> to vector<8x8x128xi32>
    %7 = arith.cmpi eq, %6, %1 : vector<8x8x128xi32>
    %8 = arith.ori %4, %7 : vector<8x8x128xi1>
    %9 = vector.extract_strided_slice %0 {offsets = [0, 0, 2], sizes = [8, 8, 1], strides = [1, 1, 1]} : vector<8x8x20xi32> to vector<8x8x1xi32>
    %10 = vector.broadcast %9 : vector<8x8x1xi32> to vector<8x8x128xi32>
    %11 = arith.cmpi eq, %10, %1 : vector<8x8x128xi32>
    %12 = arith.ori %8, %11 : vector<8x8x128xi1>
    %13 = vector.extract_strided_slice %0 {offsets = [0, 0, 3], sizes = [8, 8, 1], strides = [1, 1, 1]} : vector<8x8x20xi32> to vector<8x8x1xi32>
    %14 = vector.broadcast %13 : vector<8x8x1xi32> to vector<8x8x128xi32>
    %15 = arith.cmpi eq, %14, %1 : vector<8x8x128xi32>
    %16 = arith.ori %12, %15 : vector<8x8x128xi1>
    %17 = vector.extract_strided_slice %0 {offsets = [0, 0, 4], sizes = [8, 8, 1], strides = [1, 1, 1]} : vector<8x8x20xi32> to vector<8x8x1xi32>
    %18 = vector.broadcast %17 : vector<8x8x1xi32> to vector<8x8x128xi32>
    %19 = arith.cmpi eq, %18, %1 : vector<8x8x128xi32>
    %20 = arith.ori %16, %19 : vector<8x8x128xi1>
    %21 = arith.extui %20 : vector<8x8x128xi1> to vector<8x8x128xi32>
    %22 = arith.sitofp %21 : vector<8x8x128xi32> to vector<8x8x128xf32>
    %23 = vector.extract_strided_slice %0 {offsets = [0, 0, 5], sizes = [8, 8, 1], strides = [1, 1, 1]} : vector<8x8x20xi32> to vector<8x8x1xi32>
    %24 = vector.broadcast %23 : vector<8x8x1xi32> to vector<8x8x128xi32>
    %25 = arith.cmpi eq, %24, %1 : vector<8x8x128xi32>
    %26 = vector.extract_strided_slice %0 {offsets = [0, 0, 6], sizes = [8, 8, 1], strides = [1, 1, 1]} : vector<8x8x20xi32> to vector<8x8x1xi32>
    %27 = vector.broadcast %26 : vector<8x8x1xi32> to vector<8x8x128xi32>
    %28 = arith.cmpi eq, %27, %1 : vector<8x8x128xi32>
    %29 = arith.ori %25, %28 : vector<8x8x128xi1>
    %30 = vector.extract_strided_slice %0 {offsets = [0, 0, 7], sizes = [8, 8, 1], strides = [1, 1, 1]} : vector<8x8x20xi32> to vector<8x8x1xi32>
    %31 = vector.broadcast %30 : vector<8x8x1xi32> to vector<8x8x128xi32>
    %32 = arith.cmpi eq, %31, %1 : vector<8x8x128xi32>
    %33 = arith.ori %29, %32 : vector<8x8x128xi1>
    %34 = vector.extract_strided_slice %0 {offsets = [0, 0, 8], sizes = [8, 8, 1], strides = [1, 1, 1]} : vector<8x8x20xi32> to vector<8x8x1xi32>
    %35 = vector.broadcast %34 : vector<8x8x1xi32> to vector<8x8x128xi32>
    %36 = arith.cmpi eq, %35, %1 : vector<8x8x128xi32>
    %37 = arith.ori %33, %36 : vector<8x8x128xi1>
    %38 = vector.extract_strided_slice %0 {offsets = [0, 0, 9], sizes = [8, 8, 1], strides = [1, 1, 1]} : vector<8x8x20xi32> to vector<8x8x1xi32>
    %39 = vector.broadcast %38 : vector<8x8x1xi32> to vector<8x8x128xi32>
    %40 = arith.cmpi eq, %39, %1 : vector<8x8x128xi32>
    %41 = arith.ori %37, %40 : vector<8x8x128xi1>
    %42 = arith.extui %41 : vector<8x8x128xi1> to vector<8x8x128xi32>
    %43 = arith.sitofp %42 : vector<8x8x128xi32> to vector<8x8x128xf32>
    %44 = vector.extract_strided_slice %0 {offsets = [0, 0, 10], sizes = [8, 8, 1], strides = [1, 1, 1]} : vector<8x8x20xi32> to vector<8x8x1xi32>
    %45 = vector.broadcast %44 : vector<8x8x1xi32> to vector<8x8x128xi32>
    %46 = arith.cmpi eq, %45, %1 : vector<8x8x128xi32>
    %47 = vector.extract_strided_slice %0 {offsets = [0, 0, 11], sizes = [8, 8, 1], strides = [1, 1, 1]} : vector<8x8x20xi32> to vector<8x8x1xi32>
    %48 = vector.broadcast %47 : vector<8x8x1xi32> to vector<8x8x128xi32>
    %49 = arith.cmpi eq, %48, %1 : vector<8x8x128xi32>
    %50 = arith.ori %46, %49 : vector<8x8x128xi1>
    %51 = vector.extract_strided_slice %0 {offsets = [0, 0, 12], sizes = [8, 8, 1], strides = [1, 1, 1]} : vector<8x8x20xi32> to vector<8x8x1xi32>
    %52 = vector.broadcast %51 : vector<8x8x1xi32> to vector<8x8x128xi32>
    %53 = arith.cmpi eq, %52, %1 : vector<8x8x128xi32>
    %54 = arith.ori %50, %53 : vector<8x8x128xi1>
    %55 = vector.extract_strided_slice %0 {offsets = [0, 0, 13], sizes = [8, 8, 1], strides = [1, 1, 1]} : vector<8x8x20xi32> to vector<8x8x1xi32>
    %56 = vector.broadcast %55 : vector<8x8x1xi32> to vector<8x8x128xi32>
    %57 = arith.cmpi eq, %56, %1 : vector<8x8x128xi32>
    %58 = arith.ori %54, %57 : vector<8x8x128xi1>
    %59 = vector.extract_strided_slice %0 {offsets = [0, 0, 14], sizes = [8, 8, 1], strides = [1, 1, 1]} : vector<8x8x20xi32> to vector<8x8x1xi32>
    %60 = vector.broadcast %59 : vector<8x8x1xi32> to vector<8x8x128xi32>
    %61 = arith.cmpi eq, %60, %1 : vector<8x8x128xi32>
    %62 = arith.ori %58, %61 : vector<8x8x128xi1>
    %63 = arith.extui %62 : vector<8x8x128xi1> to vector<8x8x128xi32>
    %64 = arith.sitofp %63 : vector<8x8x128xi32> to vector<8x8x128xf32>
    %65 = vector.extract_strided_slice %0 {offsets = [0, 0, 15], sizes = [8, 8, 1], strides = [1, 1, 1]} : vector<8x8x20xi32> to vector<8x8x1xi32>
    %66 = vector.broadcast %65 : vector<8x8x1xi32> to vector<8x8x128xi32>
    %67 = arith.cmpi eq, %66, %1 : vector<8x8x128xi32>
    %68 = vector.extract_strided_slice %0 {offsets = [0, 0, 16], sizes = [8, 8, 1], strides = [1, 1, 1]} : vector<8x8x20xi32> to vector<8x8x1xi32>
    %69 = vector.broadcast %68 : vector<8x8x1xi32> to vector<8x8x128xi32>
    %70 = arith.cmpi eq, %69, %1 : vector<8x8x128xi32>
    %71 = arith.ori %67, %70 : vector<8x8x128xi1>
    %72 = vector.extract_strided_slice %0 {offsets = [0, 0, 17], sizes = [8, 8, 1], strides = [1, 1, 1]} : vector<8x8x20xi32> to vector<8x8x1xi32>
    %73 = vector.broadcast %72 : vector<8x8x1xi32> to vector<8x8x128xi32>
    %74 = arith.cmpi eq, %73, %1 : vector<8x8x128xi32>
    %75 = arith.ori %71, %74 : vector<8x8x128xi1>
    %76 = vector.extract_strided_slice %0 {offsets = [0, 0, 18], sizes = [8, 8, 1], strides = [1, 1, 1]} : vector<8x8x20xi32> to vector<8x8x1xi32>
    %77 = vector.broadcast %76 : vector<8x8x1xi32> to vector<8x8x128xi32>
    %78 = arith.cmpi eq, %77, %1 : vector<8x8x128xi32>
    %79 = arith.ori %75, %78 : vector<8x8x128xi1>
    %80 = vector.extract_strided_slice %0 {offsets = [0, 0, 19], sizes = [8, 8, 1], strides = [1, 1, 1]} : vector<8x8x20xi32> to vector<8x8x1xi32>
    %81 = vector.broadcast %80 : vector<8x8x1xi32> to vector<8x8x128xi32>
    %82 = arith.cmpi eq, %81, %1 : vector<8x8x128xi32>
    %83 = arith.ori %79, %82 : vector<8x8x128xi1>
    %84 = arith.extui %83 : vector<8x8x128xi1> to vector<8x8x128xi32>
    %85 = arith.sitofp %84 : vector<8x8x128xi32> to vector<8x8x128xf32>
    %86 = tpu.concatenate %22, %43, %64, %85 in 2 : vector<8x8x128xf32>, vector<8x8x128xf32>, vector<8x8x128xf32>, vector<8x8x128xf32> -> vector<8x8x512xf32>
    %87 = vector.shape_cast %86 : vector<8x8x512xf32> to vector<64x512xf32>
    %c0_2 = arith.constant 0 : index
    %c0_3 = arith.constant 0 : index
    %88 = vector.load %arg3[%c0_2, %c0_3] : memref<512x128xf32, #tpu.memory_space<vmem>>, vector<512x128xf32>
    %cst = arith.constant dense<0.000000e+00> : vector<64x128xf32>
    %89 = tpu.matmul %87, %88, %cst {dimension_numbers = #tpu.dot_dimension_numbers<[1], [0], [0], [1], [0, 0, 1, 1], [], []>} : vector<64x512xf32>, vector<512x128xf32>, vector<64x128xf32> -> vector<64x128xf32>
    %c0_4 = arith.constant 0 : index
    %c0_5 = arith.constant 0 : index
    %90 = vector.load %arg4[%c0_4, %c0_5] : memref<1x128xf32, #tpu.memory_space<vmem>>, vector<1x128xf32>
    %91 = vector.broadcast %90 : vector<1x128xf32> to vector<64x128xf32>
    %92 = arith.addf %89, %91 : vector<64x128xf32>
    %93 = math.tanh %92 : vector<64x128xf32>
    %94 = vector.shape_cast %93 : vector<64x128xf32> to vector<8x8x128xf32>
    %cst_6 = arith.constant dense<0xFF800000> : vector<8x128xf32>
    %95 = vector.multi_reduction <maximumf>, %94, %cst_6 [1] : vector<8x8x128xf32> to vector<8x128xf32>
    %c0_7 = arith.constant 0 : index
    %c0_8 = arith.constant 0 : index
    %96 = vector.load %arg5[%c0_7, %c0_8] : memref<128x128xf32, #tpu.memory_space<vmem>>, vector<128x128xf32>
    %cst_9 = arith.constant dense<0.000000e+00> : vector<8x128xf32>
    %97 = tpu.matmul %95, %96, %cst_9 {dimension_numbers = #tpu.dot_dimension_numbers<[1], [0], [0], [1], [0, 0, 1, 1], [], []>} : vector<8x128xf32>, vector<128x128xf32>, vector<8x128xf32> -> vector<8x128xf32>
    %c0_10 = arith.constant 0 : index
    %c0_11 = arith.constant 0 : index
    %98 = vector.load %arg6[%c0_10, %c0_11] : memref<1x128xf32, #tpu.memory_space<vmem>>, vector<1x128xf32>
    %99 = vector.broadcast %98 : vector<1x128xf32> to vector<8x128xf32>
    %100 = arith.addf %97, %99 : vector<8x128xf32>
    %c0_12 = arith.constant 0 : index
    %c0_13 = arith.constant 0 : index
    %101 = vector.load %arg7[%c0_12, %c0_13] : memref<128x128xf32, #tpu.memory_space<vmem>>, vector<128x128xf32>
    %cst_14 = arith.constant dense<0.000000e+00> : vector<8x128xf32>
    %102 = tpu.matmul %95, %101, %cst_14 {dimension_numbers = #tpu.dot_dimension_numbers<[1], [0], [0], [1], [0, 0, 1, 1], [], []>} : vector<8x128xf32>, vector<128x128xf32>, vector<8x128xf32> -> vector<8x128xf32>
    %c0_15 = arith.constant 0 : index
    %c0_16 = arith.constant 0 : index
    %103 = vector.load %arg8[%c0_15, %c0_16] : memref<1x128xf32, #tpu.memory_space<vmem>>, vector<1x128xf32>
    %104 = vector.broadcast %103 : vector<1x128xf32> to vector<8x128xf32>
    %105 = arith.addf %102, %104 : vector<8x128xf32>
    %cst_17 = arith.constant 0.000000e+00 : f32
    %106 = vector.broadcast %cst_17 : f32 to vector<8x128xf32>
    %107 = arith.maximumf %100, %106 : vector<8x128xf32>
    %108 = arith.negf %105 : vector<8x128xf32>
    %109 = math.exp %108 : vector<8x128xf32>
    %cst_18 = arith.constant 1.000000e+00 : f32
    %110 = vector.broadcast %cst_18 : f32 to vector<8x128xf32>
    %111 = arith.addf %110, %109 : vector<8x128xf32>
    %112 = arith.divf %110, %111 : vector<8x128xf32>
    %113 = arith.mulf %112, %107 : vector<8x128xf32>
    %cst_19 = arith.constant 1.000000e+00 : f32
    %114 = vector.broadcast %cst_19 : f32 to vector<8x128xf32>
    %115 = arith.subf %114, %112 : vector<8x128xf32>
    %116 = arith.mulf %115, %95 : vector<8x128xf32>
    %117 = arith.addf %113, %116 : vector<8x128xf32>
    %c0_20 = arith.constant 0 : index
    %c0_21 = arith.constant 0 : index
    %118 = vector.load %arg2[%c0_20, %c0_21] : memref<8x128xf32, #tpu.memory_space<vmem>>, vector<8x128xf32>
    %119 = arith.mulf %117, %118 : vector<8x128xf32>
    %c0_22 = arith.constant 0 : index
    %c0_23 = arith.constant 0 : index
    %120 = vector.load %arg9[%c0_22, %c0_23] : memref<8x128xf32, #tpu.memory_space<vmem>>, vector<8x128xf32>
    tpu.vector_store %arg9[%c0_22, %c0_23], %119 {strides = array<i32>} : memref<8x128xf32, #tpu.memory_space<vmem>>, vector<8x128xf32>,
    return
  }
  func.func @transform_0(%arg0: i32) -> (i32, i32, i32) {
    %c0_i32 = arith.constant 0 : i32
    %c0_i32_0 = arith.constant 0 : i32
    %c0_i32_1 = arith.constant 0 : i32
    return %arg0, %c0_i32, %c0_i32_0 : i32, i32, i32
  }
  func.func @transform_1(%arg0: i32) -> (i32, i32) {
    %c0_i32 = arith.constant 0 : i32
    %c0_i32_0 = arith.constant 0 : i32
    return %arg0, %c0_i32 : i32, i32
  }
  func.func @transform_2(%arg0: i32) -> (i32, i32) {
    %c0_i32 = arith.constant 0 : i32
    %c0_i32_0 = arith.constant 0 : i32
    %c0_i32_1 = arith.constant 0 : i32
    return %c0_i32, %c0_i32_0 : i32, i32
  }
  func.func @transform_3(%arg0: i32) -> (i32, i32) {
    %c0_i32 = arith.constant 0 : i32
    %c0_i32_0 = arith.constant 0 : i32
    %c0_i32_1 = arith.constant 0 : i32
    return %c0_i32, %c0_i32_0 : i32, i32
  }
  func.func @transform_4(%arg0: i32) -> (i32, i32) {
    %c0_i32 = arith.constant 0 : i32
    %c0_i32_0 = arith.constant 0 : i32
    %c0_i32_1 = arith.constant 0 : i32
    return %c0_i32, %c0_i32_0 : i32, i32
  }
  func.func @transform_5(%arg0: i32) -> (i32, i32) {
    %c0_i32 = arith.constant 0 : i32
    %c0_i32_0 = arith.constant 0 : i32
    %c0_i32_1 = arith.constant 0 : i32
    return %c0_i32, %c0_i32_0 : i32, i32
  }
  func.func @transform_6(%arg0: i32) -> (i32, i32) {
    %c0_i32 = arith.constant 0 : i32
    %c0_i32_0 = arith.constant 0 : i32
    %c0_i32_1 = arith.constant 0 : i32
    return %c0_i32, %c0_i32_0 : i32, i32
  }
  func.func @transform_7(%arg0: i32) -> (i32, i32) {
    %c0_i32 = arith.constant 0 : i32
    %c0_i32_0 = arith.constant 0 : i32
    %c0_i32_1 = arith.constant 0 : i32
    return %c0_i32, %c0_i32_0 : i32, i32
  }
  func.func @transform_8(%arg0: i32) -> (i32, i32) {
    %c0_i32 = arith.constant 0 : i32
    %c0_i32_0 = arith.constant 0 : i32
    return %arg0, %c0_i32 : i32, i32
  }
}

</mosaic_0001>

<bundles_post_ra>
// kernel: tpu_custom_call.1
= control target key start
LH: loop header
LB: loop body
LE: loop exit
PB: predicated region body
PF: predicated region fallthrough
CT: control target
= control target key end

     0   :  { %13 = vsyncpa [#allocation3], 0  ;;  %s2583_s0 = inlined_call_operand.hbm [shape: s32[8,8,20], index: 0, kind: input, shape index: {}]   ;;  %s2584_s1 = inlined_call_operand.hbm [shape: f32[8,128], index: 1, kind: input, shape index: {}]   ;;  %s2585_s2 = inlined_call_operand.hbm [shape: f32[512,128], index: 2, kind: input, shape index: {}]   ;;  %s2586_s3 = inlined_call_operand.vmem [shape: f32[1,128], index: 3, kind: input, shape index: {}]   ;;  %s2587_s4 = inlined_call_operand.hbm [shape: f32[128,128], index: 4, kind: input, shape index: {}]   ;;  %s2588_s5 = inlined_call_operand.vmem [shape: f32[1,128], index: 5, kind: input, shape index: {}]   ;;  %s2589_s6 = inlined_call_operand.hbm [shape: f32[128,128], index: 6, kind: input, shape index: {}]   ;;  %s2590_s7 = inlined_call_operand.vmem [shape: f32[1,128], index: 7, kind: input, shape index: {}]   ;;  %s2591_s8 = inlined_call_operand.hbm [shape: f32[8,128], index: 8, kind: output, shape index: {}]  }
   0x1   :  { %14 = vsyncpa [#allocation6], 0 }
   0x2   :  { %15 = vsyncpa [#allocation9], 0  ;;  %s35_s29 = sshll.u32 %s2584_s1, 4  ;;  %s36_s29 = int_to_ptr.hbm [resolvable:$true] %s35_s29 }
   0x3   :  { %16 = vsyncpa [#allocation4], 0  ;;  %s1730_s30 = smov [#allocation5]   ;;  %s60_s12 = sshll.u32 %s2587_s4, 4  ;;  %s61_s12 = int_to_ptr.hbm [resolvable:$true] %s60_s12 }
   0x4   :  { %s37_s9 = sshll.u32 %s1730_s30, 4  ;;  %s1731_s13 = smov [#allocation8]   ;;  %s38_s9 = int_to_ptr.vmem [resolvable:$true] %s37_s9 }
   0x5   :  { %40 = dma.hbm_to_vmem [thread:$0]  %s36_s29, 128, %s38_s9, [#allocation6]  }
   0x6   :  { %s62_s14 = sshll.u32 %s1731_s13, 4  ;;  %s21_s17 = sshll.u32 %s2583_s0, 4  ;;  %s63_s14 = int_to_ptr.vmem [resolvable:$true] %s62_s14  ;;  %s22_s17 = int_to_ptr.hbm [resolvable:$true] %s21_s17 }
   0x7   :  { %s1732_s1 = smov 128   ;;  %s1733_s18 = smov 8  }
   0x8   :  { %68 = dma.hbm_to_vmem [thread:$0]  %s61_s12, 2048, %s63_s14, [#allocation9], %s1732_s1, %s1732_s1, %s1733_s18  }
   0x9   :  { %s45_s21 = sshll.u32 %s2585_s2, 4  ;;  %s1734_s22 = smov [#allocation2]   ;;  %s46_s21 = int_to_ptr.hbm [resolvable:$true] %s45_s21 }
   0xa   :  { %s23_s23 = sshll.u32 %s1734_s22, 4  ;;  %s1735_s4 = smov [#allocation7]   ;;  %s24_s23 = int_to_ptr.vmem [resolvable:$true] %s23_s23 }
   0xb   :  { %29 = dma.hbm_to_vmem [thread:$0]  %s22_s17, 1024, %s24_s23, [#allocation3], %s1732_s1, %s1732_s1, %s1733_s18  }
   0xc   :  { %s47_s24 = sshll.u32 %s1735_s4, 4  ;;  %s75_s0 = sshll.u32 %s2589_s6, 4  ;;  %s48_s24 = int_to_ptr.vmem [resolvable:$true] %s47_s24  ;;  %s76_s0 = int_to_ptr.hbm [resolvable:$true] %s75_s0 }
   0xd   :  { %53 = dma.hbm_to_vmem [thread:$0]  %s46_s21, 8192, %s48_s24, [#allocation6], %s1732_s1, %s1732_s1, %s1733_s18  }
   0xe   :  { %s1736_s27 = smov [#allocation10]  }
   0xf   :  { %s77_s28 = sshll.u32 %s1736_s27, 4  ;;  %s78_s28 = int_to_ptr.vmem [resolvable:$true] %s77_s28 }
  0x10   :  { %83 = dma.hbm_to_vmem [thread:$0]  %s76_s0, 2048, %s78_s28, [#allocation9], %s1732_s1, %s1732_s1, %s1733_s18  }
  0x11   :  { %1722 = dma.done.wait [#allocation3], 1024  }
  0x12   :  { %1723 = vsyncadd [#allocation3], 4294966272 }
  0x13   :  { %1724 = dma.done.wait [#allocation6], 8320  }
  0x14   :  { %1725 = vsyncadd [#allocation6], 4294958976 }
  0x15   :  { %1726 = dma.done.wait [#allocation9], 4096  }
  0x16   :  { %1727 = vsyncadd [#allocation9], 4294963200  ;;  %v1737_v0 = vmov 0   ;;  %v1819_v1 = vld [vmem:[#allocation2 + $0x20] sm:$0xff]  ;;  %v1821_v2 = vld [vmem:[#allocation2 + $0x10] sm:$0xff]  ;;  %v1738_v9 = vmov 1   ;;  %v114_v41 = vlaneseq }
  0x17   :  { %1449 = vset.pattern.permute.xlu2 %v1737_v0  ;;  %1448 = vset.pattern.permute.xlu1 %v1737_v0  ;;  %v1825_v3 = vld [vmem:[#allocation2] sm:$0xff]  ;;  %v1828_v4 = vld [vmem:[#allocation2 + $0x28] sm:$0xff]  ;;  %v1830_v5 = vld [vmem:[#allocation2 + $0x18] sm:$0xff]  ;;  %v1739_v10 = vmov 2   ;;  %v1740_v11 = vmov 3   ;;  %v1741_v12 = vmov 4  }
  0x18   :  { %1447 = vset.pattern.permute.xlu0 %v1737_v0  ;;  %129 = vperm.xlu2 %1449, %v1819_v1   ;;  %v1832_v6 = vld [vmem:[#allocation2 + $0x8] sm:$0xff]  ;;  %v1837_v7 = vld [vmem:[#allocation2 + $0x38] sm:$0xff]  ;;  %v1839_v8 = vld [vmem:[#allocation2 + $0x30] sm:$0xff]  ;;  %v1742_v14 = vmov 5   ;;  %v1743_v17 = vmov 6   ;;  %v1744_v28 = vmov 7  }
  0x19   :  { %123 = vperm.xlu1 %1448, %v1821_v2   ;;  %117 = vperm.xlu0 %1447, %v1825_v3   ;;  %v963_v21 = vld [vmem:[#allocation7 + $0x78] sm:$0xff]  ;;  %v962_v25 = vld [vmem:[#allocation7 + $0x70] sm:$0xff]  ;;  %v961_v26 = vld [vmem:[#allocation7 + $0x68] sm:$0xff]  ;;  %v1745_v44 = vmov 8   ;;  %v1920_v46 = vand.u32 127, %v114_v41  ;;  %v1746_v57 = vmov 9  }
  0x1a   :  { %1016 = vmatpush.msra.mxu0 %v963_v21  ;;  %v960_v27 = vld [vmem:[#allocation7 + $0x60] sm:$0xff]  ;;  %v959_v29 = vld [vmem:[#allocation7 + $0x58] sm:$0xff]  ;;  %v958_v33 = vld [vmem:[#allocation7 + $0x50] sm:$0xff]  ;;  %s1373_s12 = sshll.u32 %s2591_s8, 4  ;;  %s1374_s12 = int_to_ptr.hbm [resolvable:$true] %s1373_s12 }
  0x1b   :  { %v957_v34 = vld [vmem:[#allocation7 + $0x48] sm:$0xff]  ;;  %v956_v35 = vld [vmem:[#allocation7 + $0x40] sm:$0xff]  ;;  %v955_v36 = vld [vmem:[#allocation7 + $0x38] sm:$0xff] }
  0x1c   :  { %1017 = vmatpush.msra.mxu0 %v962_v25  ;;  %v954_v39 = vld [vmem:[#allocation7 + $0x30] sm:$0xff]  ;;  %v953_v42 = vld [vmem:[#allocation7 + $0x28] sm:$0xff]  ;;  %v952_v43 = vld [vmem:[#allocation7 + $0x20] sm:$0xff]  ;;  %v1749_v25 = vmov 18  }
  0x1d   :  { %v951_v45 = vld [vmem:[#allocation7 + $0x18] sm:$0xff]  ;;  %v950_v49 = vld [vmem:[#allocation7 + $0x10] sm:$0xff]  ;;  %v949_v51 = vld [vmem:[#allocation7 + $0x8] sm:$0xff] }
  0x1e   :  { %1018 = vmatpush.msra.mxu0 %v961_v26  ;;  %v948_v53 = vld [vmem:[#allocation7] sm:$0xff]  ;;  %v975_v61 = vld [vmem:[#allocation7 + $0xd8] sm:$0xff] }
  0x20   :  { %132 = vperm.xlu2 %1449, %v1828_v4   ;;  %1019 = vmatpush.msra.mxu0 %v960_v27 }
  0x21   :  { %126 = vperm.xlu1 %1448, %v1830_v5   ;;  %120 = vperm.xlu0 %1447, %v1832_v6  }
  0x22   :  { %1020 = vmatpush.msra.mxu0 %v959_v29 }
  0x24   :  { %1021 = vmatpush.msra.mxu0 %v958_v33 }
  0x26   :  { %1022 = vmatpush.msra.mxu0 %v957_v34 }
  0x28   :  { %1450 = vset.pattern.permute.xlu2 %v1738_v9  ;;  %1023 = vmatpush.msra.mxu0 %v956_v35  ;;  %v1751_v35 = vmov 19  }
  0x29   :  { %138 = vperm.xlu1 %1448, %v1837_v7   ;;  %149 = vperm.xlu2 %1450, %v1825_v3  }
  0x2a   :  { %135 = vperm.xlu0 %1447, %v1839_v8   ;;  %1024 = vmatpush.msra.mxu0 %v955_v36 }
  0x2c   :  { %1025 = vmatpush.msra.mxu0 %v954_v39  ;;  %v1752_v39 = vmov 16  }
  0x2e   :  { %1026 = vmatpush.msra.mxu0 %v953_v42  ;;  %v1753_v42 = vmov 11  }
  0x30   :  { %1027 = vmatpush.msra.mxu0 %v952_v43 }
  0x31   :  { %1452 = vset.pattern.permute.xlu1 %v1738_v9  ;;  %158 = vperm.xlu2 %1450, %v1830_v5  }
  0x32   :  { %155 = vperm.xlu1 %1452, %v1821_v2   ;;  %1451 = vset.pattern.permute.xlu0 %v1738_v9  ;;  %v1747_v9 = vmov 10  }
  0x33   :  { %152 = vperm.xlu0 %1451, %v1832_v6   ;;  %1028 = vmatpush.msra.mxu0 %v951_v45 }
  0x35   :  { %1029 = vmatpush.msra.mxu0 %v950_v49 }
  0x37   :  { %1030 = vmatpush.msra.mxu0 %v949_v51  ;;  %v979_v51 = vld [vmem:[#allocation7 + $0xf8] sm:$0xff] }
  0x38   :  { %1057 = vmatpush.msra.mxu1 %v979_v51 }
  0x39   :  { %164 = vperm.xlu2 %1450, %v1828_v4   ;;  %1031 = vmatpush.msra.mxu0 %v948_v53 }
  0x3a   :  { %161 = vperm.xlu1 %1452, %v1819_v1  }
  0x3b   :  { %167 = vperm.xlu0 %1451, %v1839_v8  }
  0x41   :  { %1453 = vset.pattern.permute.xlu2 %v1739_v10 }
  0x42   :  { %170 = vperm.xlu1 %1452, %v1837_v7   ;;  %189 = vperm.xlu2 %1453, %v1825_v3  }
  0x43   :  { %1454 = vset.pattern.permute.xlu0 %v1739_v10 }
  0x44   :  { %192 = vperm.xlu0 %1454, %v1832_v6  }
  0x4a   :  { %1455 = vset.pattern.permute.xlu1 %v1739_v10  ;;  %198 = vperm.xlu2 %1453, %v1830_v5  }
  0x4b   :  { %195 = vperm.xlu1 %1455, %v1821_v2  }
  0x4c   :  { %207 = vperm.xlu0 %1454, %v1839_v8  }
  0x52   :  { %204 = vperm.xlu2 %1453, %v1828_v4  }
  0x53   :  { %201 = vperm.xlu1 %1455, %v1819_v1  }
  0x54   :  { %1457 = vset.pattern.permute.xlu0 %v1740_v11 }
  0x55   :  { %232 = vperm.xlu0 %1457, %v1832_v6  }
  0x5a   :  { %1456 = vset.pattern.permute.xlu2 %v1740_v11 }
  0x5b   :  { %210 = vperm.xlu1 %1455, %v1837_v7   ;;  %229 = vperm.xlu2 %1456, %v1825_v3  }
  0x5d   :  { %247 = vperm.xlu0 %1457, %v1839_v8  }
  0x63   :  { %1458 = vset.pattern.permute.xlu1 %v1740_v11  ;;  %238 = vperm.xlu2 %1456, %v1830_v5  }
  0x64   :  { %235 = vperm.xlu1 %1458, %v1821_v2  }
  0x65   :  { %1460 = vset.pattern.permute.xlu0 %v1741_v12 }
  0x66   :  { %272 = vperm.xlu0 %1460, %v1832_v6  }
  0x6b   :  { %244 = vperm.xlu2 %1456, %v1828_v4  }
  0x6c   :  { %241 = vperm.xlu1 %1458, %v1819_v1  }
  0x6e   :  { %287 = vperm.xlu0 %1460, %v1839_v8  }
  0x72   :  { %v1868_v13 = vpop.permute.xlu2 %129 }
  0x73   :  { %1459 = vset.pattern.permute.xlu2 %v1741_v12 }
  0x74   :  { %250 = vperm.xlu1 %1458, %v1837_v7   ;;  %269 = vperm.xlu2 %1459, %v1825_v3  }
  0x76   :  { %1463 = vset.pattern.permute.xlu0 %v1742_v14 }
  0x77   :  { %328 = vperm.xlu0 %1463, %v1832_v6  }
  0x7a   :  { %v1873_v15 = vpop.permute.xlu2 %132 }
  0x7c   :  { %1461 = vset.pattern.permute.xlu1 %v1741_v12  ;;  %278 = vperm.xlu2 %1459, %v1830_v5  }
  0x7d   :  { %275 = vperm.xlu1 %1461, %v1821_v2  }
  0x7f   :  { %343 = vperm.xlu0 %1463, %v1839_v8  }
  0x83   :  { %v1878_v16 = vpop.permute.xlu2 %149 }
  0x84   :  { %284 = vperm.xlu2 %1459, %v1828_v4   ;;  %vm172_vm5 = vcmp.eq.s32.totalorder %v1878_v16, %v1920_v46 }
  0x85   :  { %281 = vperm.xlu1 %1461, %v1819_v1  }
  0x87   :  { %1466 = vset.pattern.permute.xlu0 %v1743_v17 }
  0x88   :  { %360 = vperm.xlu0 %1466, %v1832_v6  }
  0x8b   :  { %v1884_v18 = vpop.permute.xlu1 %123  ;;  %v1886_v19 = vpop.permute.xlu2 %158 }
  0x8c   :  { %v1888_v20 = vpop.permute.xlu0 %117  ;;  %1462 = vset.pattern.permute.xlu2 %v1742_v14 }
  0x8d   :  { %290 = vperm.xlu1 %1461, %v1837_v7   ;;  %325 = vperm.xlu2 %1462, %v1825_v3   ;;  %vm140_vm6 = vcmp.eq.s32.totalorder %v1888_v20, %v1920_v46 }
  0x8e   :  { %vm180_vm7 = vmor %vm140_vm6, %vm172_vm5 }
  0x90   :  { %375 = vperm.xlu0 %1466, %v1839_v8  }
  0x93   :  { %v1893_v22 = vpop.permute.xlu1 %126  ;;  %v1895_v23 = vpop.permute.xlu2 %164 }
  0x94   :  { %v1897_v24 = vpop.permute.xlu0 %120 }
  0x95   :  { %1464 = vset.pattern.permute.xlu1 %v1742_v14  ;;  %334 = vperm.xlu2 %1462, %v1830_v5   ;;  %vm141_vm11 = vcmp.eq.s32.totalorder %v1897_v24, %v1920_v46  ;;  %v1748_v14 = vmov 0.0  }
  0x96   :  { %331 = vperm.xlu1 %1464, %v1821_v2  }
  0x98   :  { %1469 = vset.pattern.permute.xlu0 %v1744_v28 }
  0x99   :  { %400 = vperm.xlu0 %1469, %v1832_v6  }
  0x9b   :  { %v1903_v30 = vpop.permute.xlu1 %138 }
  0x9c   :  { %v136_v31 = vpop.permute.xlu0 %135  ;;  %v1905_v32 = vpop.permute.xlu2 %189 }
  0x9d   :  { %340 = vperm.xlu2 %1462, %v1828_v4   ;;  %vm146_vm0 = vcmp.eq.s32.totalorder %v136_v31, %v1920_v46  ;;  %vm212_vm8 = vcmp.eq.s32.totalorder %v1905_v32, %v1920_v46  ;;  %v1750_v31 = vmov 15  }
  0x9e   :  { %337 = vperm.xlu1 %1464, %v1819_v1   ;;  %vm220_vm10 = vmor %vm180_vm7, %vm212_vm8 }
  0xa1   :  { %415 = vperm.xlu0 %1469, %v1839_v8  }
  0xa4   :  { %v1910_v37 = vpop.permute.xlu1 %155  ;;  %v1912_v38 = vpop.permute.xlu2 %198 }
  0xa5   :  { %1465 = vset.pattern.permute.xlu2 %v1743_v17  ;;  %v1916_v40 = vpop.permute.xlu0 %152  ;;  %vm174_vm8 = vcmp.eq.s32.totalorder %v1910_v37, %v1920_v46 }
  0xa6   :  { %346 = vperm.xlu1 %1464, %v1837_v7   ;;  %357 = vperm.xlu2 %1465, %v1825_v3   ;;  %vm173_vm12 = vcmp.eq.s32.totalorder %v1916_v40, %v1920_v46 }
  0xa9   :  { %1472 = vset.pattern.permute.xlu0 %v1745_v44 }
  0xaa   :  { %440 = vperm.xlu0 %1472, %v1832_v6  }
  0xac   :  { %v1923_v47 = vpop.permute.xlu1 %161  ;;  %v1925_v48 = vpop.permute.xlu2 %204 }
  0xad   :  { %v168_v50 = vpop.permute.xlu0 %167 }
  0xae   :  { %1467 = vset.pattern.permute.xlu1 %v1743_v17  ;;  %366 = vperm.xlu2 %1465, %v1830_v5   ;;  %vm178_vm1 = vcmp.eq.s32.totalorder %v168_v50, %v1920_v46 }
  0xaf   :  { %363 = vperm.xlu1 %1467, %v1821_v2   ;;  %vm1932_vm2 = vmor %vm146_vm0, %vm178_vm1 }
  0xb0   :  { %vm181_vm0 = vmor %vm141_vm11, %vm173_vm12 }
  0xb2   :  { %455 = vperm.xlu0 %1472, %v1839_v8  }
  0xb4   :  { %v1937_v54 = vpop.permute.xlu1 %170 }
  0xb5   :  { %v230_v55 = vpop.permute.xlu2 %229 }
  0xb6   :  { %372 = vperm.xlu2 %1465, %v1828_v4   ;;  %v193_v56 = vpop.permute.xlu0 %192  ;;  %vm252_vm9 = vcmp.eq.s32.totalorder %v230_v55, %v1920_v46 }
  0xb7   :  { %369 = vperm.xlu1 %1467, %v1819_v1   ;;  %vm260_vm14 = vmor %vm220_vm10, %vm252_vm9  ;;  %vm213_vm1 = vcmp.eq.s32.totalorder %v193_v56, %v1920_v46  ;;  %vm142_vm10 = vcmp.eq.s32.totalorder %v1884_v18, %v1920_v46 }
  0xb8   :  { %vm182_vm12 = vmor %vm142_vm10, %vm174_vm8 }
  0xba   :  { %1475 = vset.pattern.permute.xlu0 %v1746_v57 }
  0xbb   :  { %480 = vperm.xlu0 %1475, %v1832_v6  }
  0xbd   :  { %v1943_v58 = vpop.permute.xlu1 %195  ;;  %v1945_v59 = vpop.permute.xlu2 %238 }
  0xbe   :  { %1468 = vset.pattern.permute.xlu2 %v1744_v28  ;;  %v208_v60 = vpop.permute.xlu0 %207  ;;  %vm214_vm9 = vcmp.eq.s32.totalorder %v1943_v58, %v1920_v46 }
  0xbf   :  { %378 = vperm.xlu1 %1467, %v1837_v7   ;;  %397 = vperm.xlu2 %1468, %v1825_v3   ;;  %vm218_vm3 = vcmp.eq.s32.totalorder %v208_v60, %v1920_v46 }
  0xc0   :  { %vm1953_vm4 = vmor %vm1932_vm2, %vm218_vm3 }
  0xc1   :  { %vm221_vm2 = vmor %vm181_vm0, %vm213_vm1  ;;  %vm175_vm0 = vcmp.eq.s32.totalorder %v1886_v19, %v1920_v46  ;;  %vm143_vm1 = vcmp.eq.s32.totalorder %v1893_v22, %v1920_v46 }
  0xc3   :  { %495 = vperm.xlu0 %1475, %v1839_v8  }
  0xc5   :  { %v1958_v62 = vpop.permute.xlu1 %201  ;;  %v1960_v63 = vpop.permute.xlu2 %244 }
  0xc7   :  { %1470 = vset.pattern.permute.xlu1 %v1744_v28  ;;  %406 = vperm.xlu2 %1468, %v1830_v5   ;;  %v233_v0 = vpop.permute.xlu0 %232 }
  0xc8   :  { %403 = vperm.xlu1 %1470, %v1821_v2   ;;  %vm253_vm3 = vcmp.eq.s32.totalorder %v233_v0, %v1920_v46  ;;  %v974_v0 = vld [vmem:[#allocation7 + $0xd0] sm:$0xff] }
  0xc9   :  { %vm261_vm5 = vmor %vm221_vm2, %vm253_vm3  ;;  %vm215_vm3 = vcmp.eq.s32.totalorder %v1912_v38, %v1920_v46 }
  0xcb   :  { %1478 = vset.pattern.permute.xlu0 %v1747_v9 }
  0xcc   :  { %536 = vperm.xlu0 %1478, %v1832_v6  }
  0xcd   :  { %v1973_v10 = vpop.permute.xlu1 %210 }
  0xce   :  { %v270_v11 = vpop.permute.xlu2 %269 }
  0xcf   :  { %vm292_vm13 = vcmp.eq.s32.totalorder %v270_v11, %v1920_v46  ;;  %412 = vperm.xlu2 %1468, %v1828_v4   ;;  %v1983_v12 = vpop.permute.xlu0 %247  ;;  %v972_v11 = vld [vmem:[#allocation7 + $0xc0] sm:$0xff] }
  0xd0   :  { %409 = vperm.xlu1 %1470, %v1819_v1   ;;  %vm300_vm15 = vmor %vm260_vm14, %vm292_vm13 }
  0xd1   :  { %v1385_v16 = vsel %vm300_vm15, 1.0, %v1748_v14  ;;  %vm222_vm13 = vmor %vm182_vm12, %vm214_vm9  ;;  %vm216_vm12 = vcmp.eq.s32.totalorder %v1958_v62, %v1920_v46 }
  0xd2   :  { %1032 = vmatmul.f32.vlgmr.msra.gmra.mxu0 %v1385_v16  ;;  %v971_v16 = vld [vmem:[#allocation7 + $0xb8] sm:$0xff] }
  0xd4   :  { %551 = vperm.xlu0 %1478, %v1839_v8  }
  0xd6   :  { %v236_v17 = vpop.permute.xlu1 %235  ;;  %v279_v20 = vpop.permute.xlu2 %278 }
  0xd7   :  { %1471 = vset.pattern.permute.xlu2 %v1745_v44  ;;  %vm254_vm11 = vcmp.eq.s32.totalorder %v236_v17, %v1920_v46 }
  0xd8   :  { %418 = vperm.xlu1 %1470, %v1837_v7   ;;  %437 = vperm.xlu2 %1471, %v1825_v3   ;;  %v273_v21 = vpop.permute.xlu0 %272  ;;  %vm262_vm15 = vmor %vm222_vm13, %vm254_vm11  ;;  %vm176_vm11 = vcmp.eq.s32.totalorder %v1923_v47, %v1920_v46  ;;  %vm144_vm13 = vcmp.eq.s32.totalorder %v1868_v13, %v1920_v46 }
  0xd9   :  { %vm293_vm6 = vcmp.eq.s32.totalorder %v273_v21, %v1920_v46 }
  0xda   :  { %vm301_vm7 = vmor %vm261_vm5, %vm293_vm6  ;;  %vm255_vm5 = vcmp.eq.s32.totalorder %v1945_v59, %v1920_v46  ;;  %v976_v59 = vld [vmem:[#allocation7 + $0xe0] sm:$0xff] }
  0xdb   :  { %v1386_v24 = vsel %vm301_vm7, 1.0, %v1748_v14  ;;  %vm183_vm6 = vmor %vm143_vm1, %vm175_vm0  ;;  %vm295_vm7 = vcmp.eq.s32.totalorder %v279_v20, %v1920_v46  ;;  %v1572_v20 = vld [vmem:[#allocation2 + $0x10] sm:$0xff] }
  0xdc   :  { %1035 = vmatmul.f32.gmra.mxu0 %v1386_v24  ;;  %1493 = vset.pattern.permute.xlu0 %v1749_v25  ;;  %vm223_vm8 = vmor %vm183_vm6, %vm215_vm3  ;;  %vm177_vm3 = vcmp.eq.s32.totalorder %v1895_v23, %v1920_v46  ;;  %v1755_v24 = vmov 12  }
  0xdd   :  { %856 = vperm.xlu0 %1493, %v1832_v6   ;;  %vm263_vm9 = vmor %vm223_vm8, %vm255_vm5  ;;  %vm217_vm8 = vcmp.eq.s32.totalorder %v1925_v48, %v1920_v46 }
  0xde   :  { %v242_v26 = vpop.permute.xlu1 %241  ;;  %v1996_v27 = vpop.permute.xlu2 %284  ;;  %vm303_vm10 = vmor %vm263_vm9, %vm295_vm7  ;;  %vm145_vm7 = vcmp.eq.s32.totalorder %v1873_v15, %v1920_v46 }
  0xdf   :  { %v1388_v38 = vsel %vm303_vm10, 1.0, %v1748_v14  ;;  %vm185_vm9 = vmor %vm145_vm7, %vm177_vm3  ;;  %vm258_vm3 = vcmp.eq.s32.totalorder %v1983_v12, %v1920_v46 }
  0xe0   :  { %1473 = vset.pattern.permute.xlu1 %v1745_v44  ;;  %446 = vperm.xlu2 %1471, %v1830_v5   ;;  %v2001_v28 = vpop.permute.xlu0 %287  ;;  %v981_v44 = vld [vmem:[#allocation7 + $0x108] sm:$0xff] }
  0xe1   :  { %443 = vperm.xlu1 %1473, %v1821_v2  }
  0xe5   :  { %1498 = vset.pattern.permute.xlu0 %v1750_v31 }
  0xe6   :  { %v2003_v29 = vpop.permute.xlu1 %250  ;;  %747 = vperm.xlu0 %1498, %v1821_v2  }
  0xe7   :  { %v2007_v32 = vpop.permute.xlu2 %325 }
  0xe8   :  { %452 = vperm.xlu2 %1471, %v1828_v4   ;;  %vm348_vm6 = vcmp.eq.s32.totalorder %v2007_v32, %v1920_v46 }
  0xe9   :  { %449 = vperm.xlu1 %1473, %v1819_v1   ;;  %v2011_v33 = vpop.permute.xlu0 %328 }
  0xee   :  { %1503 = vset.pattern.permute.xlu0 %v1751_v35 }
  0xef   :  { %v276_v34 = vpop.permute.xlu1 %275  ;;  %v2022_v36 = vpop.permute.xlu2 %334  ;;  %899 = vperm.xlu0 %1503, %v1821_v2  }
  0xf0   :  { %vm294_vm14 = vcmp.eq.s32.totalorder %v276_v34, %v1920_v46  ;;  %1474 = vset.pattern.permute.xlu2 %v1746_v57  ;;  %vm351_vm7 = vcmp.eq.s32.totalorder %v2022_v36, %v1920_v46  ;;  %v967_v36 = vld [vmem:[#allocation7 + $0x98] sm:$0xff] }
  0xf1   :  { %458 = vperm.xlu1 %1473, %v1837_v7   ;;  %vm302_vm2 = vmor %vm262_vm15, %vm294_vm14  ;;  %477 = vperm.xlu2 %1474, %v1825_v3   ;;  %v344_v37 = vpop.permute.xlu0 %343  ;;  %vm256_vm14 = vcmp.eq.s32.totalorder %v242_v26, %v1920_v46 }
  0xf2   :  { %v1387_v18 = vsel %vm302_vm2, 1.0, %v1748_v14  ;;  %vm184_vm15 = vmor %vm144_vm13, %vm176_vm11  ;;  %vm354_vm11 = vcmp.eq.s32.totalorder %v344_v37, %v1920_v46 }
  0xf3   :  { %1038 = vmatmul.f32.gmra.mxu0 %v1387_v18  ;;  %vm224_vm1 = vmor %vm184_vm15, %vm216_vm12  ;;  %vm257_vm12 = vcmp.eq.s32.totalorder %v1960_v63, %v1920_v46  ;;  %vm297_vm15 = vcmp.eq.s32.totalorder %v1996_v27, %v1920_v46  ;;  %v969_v27 = vld [vmem:[#allocation7 + $0xa8] sm:$0xff] }
  0xf4   :  { %vm264_vm2 = vmor %vm224_vm1, %vm256_vm14 }
  0xf5   :  { %vm225_vm14 = vmor %vm185_vm9, %vm217_vm8  ;;  %vm298_vm9 = vcmp.eq.s32.totalorder %v2001_v28, %v1920_v46  ;;  %v2610_v28 = vmov 0 }
  0xf7   :  { %v282_v19 = vpop.permute.xlu1 %281  ;;  %v2038_v22 = vpop.permute.xlu2 %340  ;;  %1508 = vset.pattern.permute.xlu0 %v1752_v39 }
  0xf8   :  { %782 = vperm.xlu0 %1508, %v1830_v5   ;;  %vm296_vm0 = vcmp.eq.s32.totalorder %v282_v19, %v1920_v46  ;;  %v1756_v19 = vmov 13  }
  0xf9   :  { %1476 = vset.pattern.permute.xlu1 %v1746_v57  ;;  %486 = vperm.xlu2 %1474, %v1830_v5   ;;  %vm304_vm5 = vmor %vm264_vm2, %vm296_vm0  ;;  %v1754_v57 = vmov 14  }
  0xfa   :  { %483 = vperm.xlu1 %1476, %v1821_v2   ;;  %v2053_v40 = vpop.permute.xlu0 %360  ;;  %v1389_v23 = vsel %vm304_vm5, 1.0, %v1748_v14  ;;  %vm265_vm2 = vmor %vm225_vm14, %vm257_vm12  ;;  %vm219_vm12 = vcmp.eq.s32.totalorder %v1973_v10, %v1920_v46  ;;  %vm353_vm14 = vcmp.eq.s32.totalorder %v2038_v22, %v1920_v46  ;;  %v973_v10 = vld [vmem:[#allocation7 + $0xc8] sm:$0xff]  ;;  %v966_v22 = vld [vmem:[#allocation7 + $0x90] sm:$0xff] }
  0xfb   :  { %1041 = vmatmul.f32.gmra.mxu0 %v1388_v38  ;;  %vm305_vm5 = vmor %vm265_vm2, %vm297_vm15  ;;  %v1757_v38 = vmov 17  }
  0xfc   :  { %v1390_v48 = vsel %vm305_vm5, 1.0, %v1748_v14  ;;  %vm259_vm5 = vcmp.eq.s32.totalorder %v2003_v29, %v1920_v46  ;;  %v968_v29 = vld [vmem:[#allocation7 + $0xa0] sm:$0xff] }
  0xff   :  { %v2058_v41 = vpop.permute.xlu1 %290 }
 0x100   :  { %v358_v13 = vpop.permute.xlu2 %357  ;;  %1509 = vset.pattern.permute.xlu0 %v1753_v42 }
 0x101   :  { %vm380_vm10 = vcmp.eq.s32.totalorder %v358_v13, %v1920_v46  ;;  %492 = vperm.xlu2 %1474, %v1828_v4   ;;  %568 = vperm.xlu0 %1509, %v1832_v6  }
 0x102   :  { %489 = vperm.xlu1 %1476, %v1819_v1   ;;  %vm2074_vm13 = vmor %vm348_vm6, %vm380_vm10  ;;  %v376_v43 = vpop.permute.xlu0 %375 }
 0x103   :  { %1044 = vmatmul.f32.gmra.mxu0 %v1389_v23  ;;  %vm386_vm0 = vcmp.eq.s32.totalorder %v376_v43, %v1920_v46  ;;  %vm266_vm6 = vmor %vm1953_vm4, %vm258_vm3  ;;  %v964_v23 = vld [vmem:[#allocation7 + $0x80] sm:$0xff] }
 0x104   :  { %vm2085_vm1 = vmor %vm354_vm11, %vm386_vm0  ;;  %vm179_vm11 = vcmp.eq.s32.totalorder %v1937_v54, %v1920_v46  ;;  %vm147_vm0 = vcmp.eq.s32.totalorder %v1903_v30, %v1920_v46  ;;  %v978_v54 = vld [vmem:[#allocation7 + $0xf0] sm:$0xff]  ;;  %v995_v30 = vld [vmem:[#allocation7 + $0x178] sm:$0xff] }
 0x105   :  { %vm306_vm4 = vmor %vm266_vm6, %vm298_vm9  ;;  %1058 = vmatpush.msra.mxu1 %v978_v54  ;;  %1098 = vmatpush.msra.mxu2 %v995_v30  ;;  %v1002_v30 = vld [vmem:[#allocation7 + $0x1b0] sm:$0xff] }
 0x106   :  { %v1391_v55 = vsel %vm306_vm4, 1.0, %v1748_v14  ;;  %vm187_vm3 = vmor %vm147_vm0, %vm179_vm11 }
 0x107   :  { %vm227_vm6 = vmor %vm187_vm3, %vm219_vm12 }
 0x108   :  { %v2091_v45 = vpop.permute.xlu1 %331  ;;  %v367_v47 = vpop.permute.xlu2 %366  ;;  %vm267_vm4 = vmor %vm227_vm6, %vm259_vm5 }
 0x109   :  { %vm383_vm8 = vcmp.eq.s32.totalorder %v367_v47, %v1920_v46  ;;  %1477 = vset.pattern.permute.xlu2 %v1747_v9  ;;  %577 = vperm.xlu0 %1509, %v1819_v1  }
 0x10a   :  { %498 = vperm.xlu1 %1476, %v1837_v7   ;;  %vm2103_vm10 = vmor %vm351_vm7, %vm383_vm8  ;;  %533 = vperm.xlu2 %1477, %v1825_v3   ;;  %vm299_vm7 = vcmp.eq.s32.totalorder %v2058_v41, %v1920_v46  ;;  %v965_v41 = vld [vmem:[#allocation7 + $0x88] sm:$0xff] }
 0x10b   :  { %1047 = vmatmul.f32.gmra.mxu0 %v1390_v48  ;;  %v2109_v50 = vpop.permute.xlu0 %400  ;;  %vm307_vm11 = vmor %vm267_vm4, %vm299_vm7 }
 0x10c   :  { %v1392_v63 = vsel %vm307_vm11, 1.0, %v1748_v14 }
 0x110   :  { %v2111_v52 = vpop.permute.xlu1 %337  ;;  %v373_v53 = vpop.permute.xlu2 %372 }
 0x111   :  { %vm385_vm15 = vcmp.eq.s32.totalorder %v373_v53, %v1920_v46  ;;  %1514 = vset.pattern.permute.xlu0 %v1754_v57 }
 0x112   :  { %1479 = vset.pattern.permute.xlu1 %v1747_v9  ;;  %vm2124_vm2 = vmor %vm353_vm14, %vm385_vm15  ;;  %542 = vperm.xlu2 %1477, %v1830_v5   ;;  %v977_v5 = vld [vmem:[#allocation7 + $0xe8] sm:$0xff] }
 0x113   :  { %539 = vperm.xlu1 %1479, %v1821_v2   ;;  %1050 = vmatmul.f32.gmra.mxu0 %v1391_v55  ;;  %v416_v58 = vpop.permute.xlu0 %415 }
 0x114   :  { %685 = vperm.xlu0 %1514, %v1825_v3   ;;  %vm426_vm8 = vcmp.eq.s32.totalorder %v416_v58, %v1920_v46  ;;  %1059 = vmatpush.msra.mxu1 %v977_v5 }
 0x115   :  { %vm2142_vm9 = vmor %vm2085_vm1, %vm426_vm8  ;;  %vm350_vm1 = vcmp.eq.s32.totalorder %v2091_v45, %v1920_v46 }
 0x116   :  { %1060 = vmatpush.msra.mxu1 %v976_v59 }
 0x118   :  { %v2146_v60 = vpop.permute.xlu1 %346  ;;  %1061 = vmatpush.msra.mxu1 %v975_v61  ;;  %v994_v61 = vld [vmem:[#allocation7 + $0x170] sm:$0xff] }
 0x119   :  { %v2148_v62 = vpop.permute.xlu2 %397  ;;  %1099 = vmatpush.msra.mxu2 %v994_v61 }
 0x11a   :  { %548 = vperm.xlu2 %1477, %v1828_v4   ;;  %1062 = vmatpush.msra.mxu1 %v974_v0 }
 0x11b   :  { %545 = vperm.xlu1 %1479, %v1819_v1   ;;  %1053 = vmatmul.f32.gmra.mxu0 %v1392_v63  ;;  %v991_v63 = vld [vmem:[#allocation7 + $0x158] sm:$0xff] }
 0x11c   :  { %697 = vperm.xlu0 %1514, %v1819_v1   ;;  %v2154_v9 = vpop.permute.xlu0 %440  ;;  %1063 = vmatpush.msra.mxu1 %v973_v10  ;;  %v970_v1 = vld [vmem:[#allocation7 + $0xb0] sm:$0xff] }
 0x11e   :  { %1064 = vmatpush.msra.mxu1 %v972_v11  ;;  %v990_v11 = vld [vmem:[#allocation7 + $0x150] sm:$0xff] }
 0x120   :  { %1065 = vmatpush.msra.mxu1 %v971_v16  ;;  %v988_v16 = vld [vmem:[#allocation7 + $0x140] sm:$0xff] }
 0x121   :  { %v364_v12 = vpop.permute.xlu1 %363  ;;  %v407_v17 = vpop.permute.xlu2 %406 }
 0x122   :  { %vm382_vm12 = vcmp.eq.s32.totalorder %v364_v12, %v1920_v46  ;;  %vm423_vm15 = vcmp.eq.s32.totalorder %v407_v17, %v1920_v46  ;;  %1480 = vset.pattern.permute.xlu2 %v1753_v42  ;;  %1066 = vmatpush.msra.mxu1 %v970_v1  ;;  %v989_v12 = vld [vmem:[#allocation7 + $0x148] sm:$0xff] }
 0x123   :  { %vm2159_vm14 = vmor %vm350_vm1, %vm382_vm12  ;;  %554 = vperm.xlu1 %1479, %v1837_v7   ;;  %565 = vperm.xlu2 %1480, %v1825_v3   ;;  %vm349_vm1 = vcmp.eq.s32.totalorder %v2011_v33, %v1920_v46  ;;  %vm381_vm12 = vcmp.eq.s32.totalorder %v2053_v40, %v1920_v46 }
 0x124   :  { %vm2168_vm0 = vmor %vm2103_vm10, %vm423_vm15  ;;  %1523 = vset.pattern.permute.xlu0 %v1755_v24  ;;  %v456_v26 = vpop.permute.xlu0 %455  ;;  %1067 = vmatpush.msra.mxu1 %v969_v27  ;;  %vm352_vm10 = vcmp.eq.s32.totalorder %v2111_v52, %v1920_v46  ;;  %v986_v27 = vld [vmem:[#allocation7 + $0x130] sm:$0xff] }
 0x125   :  { %620 = vperm.xlu0 %1523, %v1828_v4   ;;  %vm466_vm3 = vcmp.eq.s32.totalorder %v456_v26, %v1920_v46  ;;  %vm389_vm15 = vmor %vm349_vm1, %vm381_vm12 }
 0x126   :  { %vm2178_vm5 = vmor %vm2142_vm9, %vm466_vm3  ;;  %1068 = vmatpush.msra.mxu1 %v968_v29  ;;  %vm421_vm3 = vcmp.eq.s32.totalorder %v2109_v50, %v1920_v46  ;;  %v985_v29 = vld [vmem:[#allocation7 + $0x128] sm:$0xff] }
 0x127   :  { %v2611_v28 = vsel %vm2178_vm5, 4294967295, %v2610_v28  ;;  %vm461_vm5 = vcmp.eq.s32.totalorder %v2154_v9, %v1920_v46 }
 0x128   :  { %1069 = vmatpush.msra.mxu1 %v967_v36  ;;  %v983_v36 = vld [vmem:[#allocation7 + $0x118] sm:$0xff] }
 0x129   :  { %v370_v32 = vpop.permute.xlu1 %369  ;;  %v413_v34 = vpop.permute.xlu2 %412 }
 0x12a   :  { %vm384_vm6 = vcmp.eq.s32.totalorder %v370_v32, %v1920_v46  ;;  %vm425_vm8 = vcmp.eq.s32.totalorder %v413_v34, %v1920_v46  ;;  %1070 = vmatpush.msra.mxu1 %v966_v22  ;;  %v984_v32 = vld [vmem:[#allocation7 + $0x120] sm:$0xff]  ;;  %v1011_v34 = vld [vmem:[#allocation7 + $0x1f8] sm:$0xff] }
 0x12b   :  { %vm2185_vm7 = vmor %vm352_vm10, %vm384_vm6  ;;  %1481 = vset.pattern.permute.xlu1 %v1755_v24  ;;  %1482 = vset.pattern.permute.xlu2 %v1756_v19  ;;  %vm420_vm10 = vcmp.eq.s32.totalorder %v2148_v62, %v1920_v46  ;;  %v992_v62 = vld [vmem:[#allocation7 + $0x160] sm:$0xff] }
 0x12c   :  { %vm2193_vm9 = vmor %vm2124_vm2, %vm425_vm8  ;;  %605 = vperm.xlu1 %1481, %v1825_v3   ;;  %645 = vperm.xlu2 %1482, %v1825_v3   ;;  %vm355_vm2 = vcmp.eq.s32.totalorder %v2146_v60, %v1920_v46 }
 0x12d   :  { %1528 = vset.pattern.permute.xlu0 %v1757_v38  ;;  %v481_v13 = vpop.permute.xlu0 %480  ;;  %1071 = vmatpush.msra.mxu1 %v965_v41  ;;  %vm429_vm6 = vmor %vm389_vm15, %vm421_vm3 }
 0x12e   :  { %828 = vperm.xlu0 %1528, %v1828_v4   ;;  %1139 = vmatpush.msra.mxu3 %v1011_v34 }
 0x12f   :  { %1072 = vmatpush.msra.mxu1 %v964_v23  ;;  %v982_v23 = vld [vmem:[#allocation7 + $0x110] sm:$0xff] }
 0x131   :  { %v379_v43 = vpop.permute.xlu1 %378 }
 0x132   :  { %vm387_vm4 = vcmp.eq.s32.totalorder %v379_v43, %v1920_v46  ;;  %v438_v45 = vpop.permute.xlu2 %437  ;;  %v1010_v43 = vld [vmem:[#allocation7 + $0x1f0] sm:$0xff] }
 0x133   :  { %vm2205_vm11 = vmor %vm355_vm2, %vm387_vm4  ;;  %vm460_vm8 = vcmp.eq.s32.totalorder %v438_v45, %v1920_v46  ;;  %1140 = vmatpush.msra.mxu3 %v1010_v43  ;;  %v1009_v45 = vld [vmem:[#allocation7 + $0x1e8] sm:$0xff] }
 0x134   :  { %1483 = vset.pattern.permute.xlu1 %v1750_v31  ;;  %1484 = vset.pattern.permute.xlu2 %v1752_v39  ;;  %vm428_vm2 = vmor %vm2074_vm13, %vm420_vm10 }
 0x135   :  { %741 = vperm.xlu1 %1483, %v1825_v3   ;;  %773 = vperm.xlu2 %1484, %v1825_v3   ;;  %v2215_v4 = vpop.permute.xlu0 %495  ;;  %vm468_vm12 = vmor %vm428_vm2, %vm460_vm8 }
 0x136   :  { %1529 = vset.pattern.permute.xlu0 %v1756_v19  ;;  %vm469_vm13 = vmor %vm429_vm6, %vm461_vm5  ;;  %1141 = vmatpush.msra.mxu3 %v1009_v45  ;;  %v1575_v45 = vld [vmem:[#allocation2 + $0x28] sm:$0xff] }
 0x137   :  { %648 = vperm.xlu0 %1529, %v1832_v6  }
 0x13a   :  { %v2217_v47 = vpop.permute.xlu1 %403  ;;  %v2219_v48 = vpop.permute.xlu2 %446 }
 0x13b   :  { %vm422_vm5 = vcmp.eq.s32.totalorder %v2217_v47, %v1920_v46  ;;  %v980_v47 = vld [vmem:[#allocation7 + $0x100] sm:$0xff] }
 0x13c   :  { %vm430_vm8 = vmor %vm2159_vm14, %vm422_vm5 }
 0x13d   :  { %1485 = vset.pattern.permute.xlu1 %v1757_v38  ;;  %1486 = vset.pattern.permute.xlu2 %v1749_v25 }
 0x13e   :  { %813 = vperm.xlu1 %1485, %v1825_v3   ;;  %853 = vperm.xlu2 %1486, %v1825_v3   ;;  %v2230_v52 = vpop.permute.xlu0 %536 }
 0x13f   :  { %663 = vperm.xlu0 %1529, %v1839_v8  }
 0x142   :  { %v2226_v49 = vpop.permute.xlu1 %409  ;;  %v2228_v51 = vpop.permute.xlu2 %452 }
 0x146   :  { %1487 = vset.pattern.permute.xlu1 %v1751_v35  ;;  %1488 = vset.pattern.permute.xlu2 %v1755_v24 }
 0x147   :  { %893 = vperm.xlu1 %1487, %v1825_v3   ;;  %608 = vperm.xlu2 %1488, %v1832_v6  }
 0x148   :  { %1538 = vset.pattern.permute.xlu0 %v1749_v25 }
 0x149   :  { %871 = vperm.xlu0 %1538, %v1839_v8   ;;  %v2259_v8 = vpop.permute.xlu0 %551 }
 0x14a   :  { %v419_v33 = vpop.permute.xlu1 %418 }
 0x14b   :  { %vm427_vm4 = vcmp.eq.s32.totalorder %v419_v33, %v1920_v46  ;;  %v478_v40 = vpop.permute.xlu2 %477  ;;  %v2344_v33 = vld [vmem:[#allocation2 + $0x18] sm:$0xff] }
 0x14c   :  { %vm2252_vm1 = vmor %vm2205_vm11, %vm427_vm4  ;;  %vm500_vm15 = vcmp.eq.s32.totalorder %v478_v40, %v1920_v46  ;;  %vm501_vm11 = vcmp.eq.s32.totalorder %v481_v13, %v1920_v46 }
 0x14d   :  { %vm508_vm3 = vmor %vm468_vm12, %vm500_vm15  ;;  %vm463_vm15 = vcmp.eq.s32.totalorder %v2219_v48, %v1920_v46  ;;  %v1008_v48 = vld [vmem:[#allocation7 + $0x1e0] sm:$0xff] }
 0x14e   :  { %v1393_v15 = vsel %vm508_vm3, 1.0, %v1748_v14  ;;  %vm509_vm10 = vmor %vm469_vm13, %vm501_vm11  ;;  %1142 = vmatpush.msra.mxu3 %v1008_v48 }
 0x14f   :  { %1489 = vset.pattern.permute.xlu1 %v1750_v31  ;;  %1490 = vset.pattern.permute.xlu2 %v1752_v39  ;;  %v1394_v55 = vsel %vm509_vm10, 1.0, %v1748_v14  ;;  %vm471_vm3 = vmor %vm2168_vm0, %vm463_vm15  ;;  %vm424_vm0 = vcmp.eq.s32.totalorder %v2226_v49, %v1920_v46  ;;  %v1007_v49 = vld [vmem:[#allocation7 + $0x1d8] sm:$0xff]  ;;  %vm506_vm15 = vcmp.eq.s32.totalorder %v2215_v4, %v1920_v46  ;;  %v1004_v4 = vld [vmem:[#allocation7 + $0x1c0] sm:$0xff] }
 0x150   :  { %744 = vperm.xlu1 %1489, %v1832_v6   ;;  %1073 = vmatmul.f32.vlgmr.msra.gmra.mxu1 %v1393_v15  ;;  %vm432_vm5 = vmor %vm2185_vm7, %vm424_vm0  ;;  %vm465_vm7 = vcmp.eq.s32.totalorder %v2228_v51, %v1920_v46  ;;  %v1006_v15 = vld [vmem:[#allocation7 + $0x1d0] sm:$0xff] }
 0x151   :  { %776 = vperm.xlu2 %1490, %v1832_v6   ;;  %1543 = vset.pattern.permute.xlu0 %v1750_v31  ;;  %v2270_v56 = vpop.permute.xlu0 %856 }
 0x152   :  { %762 = vperm.xlu0 %1543, %v1837_v7   ;;  %1143 = vmatpush.msra.mxu3 %v1007_v49 }
 0x153   :  { %v444_v50 = vpop.permute.xlu1 %443  ;;  %v487_v53 = vpop.permute.xlu2 %486 }
 0x154   :  { %vm462_vm6 = vcmp.eq.s32.totalorder %v444_v50, %v1920_v46  ;;  %vm503_vm14 = vcmp.eq.s32.totalorder %v487_v53, %v1920_v46  ;;  %1144 = vmatpush.msra.mxu3 %v1006_v15  ;;  %v1005_v53 = vld [vmem:[#allocation7 + $0x1c8] sm:$0xff] }
 0x155   :  { %vm470_vm2 = vmor %vm430_vm8, %vm462_vm6 }
 0x156   :  { %vm511_vm13 = vmor %vm471_vm3, %vm503_vm14  ;;  %1145 = vmatpush.msra.mxu3 %v1005_v53 }
 0x157   :  { %v1396_v21 = vsel %vm511_vm13, 1.0, %v1748_v14 }
 0x158   :  { %1491 = vset.pattern.permute.xlu1 %v1754_v57  ;;  %1076 = vmatmul.f32.gmra.mxu1 %v1394_v55  ;;  %v1003_v55 = vld [vmem:[#allocation7 + $0x1b8] sm:$0xff] }
 0x159   :  { %688 = vperm.xlu1 %1491, %v1832_v6   ;;  %1492 = vset.pattern.permute.xlu2 %v1757_v38  ;;  %v2283_v5 = vpop.permute.xlu0 %747 }
 0x15a   :  { %816 = vperm.xlu2 %1492, %v1832_v6   ;;  %1548 = vset.pattern.permute.xlu0 %v1751_v35 }
 0x15b   :  { %v2276_v54 = vpop.permute.xlu1 %449  ;;  %914 = vperm.xlu0 %1548, %v1837_v7   ;;  %v2280_v58 = vpop.permute.xlu2 %492  ;;  %v993_v7 = vld [vmem:[#allocation7 + $0x168] sm:$0xff]  ;;  %1146 = vmatpush.msra.mxu3 %v1004_v4 }
 0x15c   :  { %1100 = vmatpush.msra.mxu2 %v993_v7  ;;  %vm464_vm11 = vcmp.eq.s32.totalorder %v2276_v54, %v1920_v46  ;;  %v1001_v7 = vld [vmem:[#allocation7 + $0x1a8] sm:$0xff] }
 0x15d   :  { %vm472_vm6 = vmor %vm432_vm5, %vm464_vm11  ;;  %1147 = vmatpush.msra.mxu3 %v1003_v55 }
 0x15e   :  { %1101 = vmatpush.msra.mxu2 %v992_v62  ;;  %v1000_v62 = vld [vmem:[#allocation7 + $0x1a0] sm:$0xff] }
 0x15f   :  { %1148 = vmatpush.msra.mxu3 %v1002_v30 }
 0x160   :  { %1102 = vmatpush.msra.mxu2 %v991_v63 }
 0x161   :  { %1494 = vset.pattern.permute.xlu1 %v1751_v35  ;;  %1149 = vmatpush.msra.mxu3 %v1001_v7 }
 0x162   :  { %896 = vperm.xlu1 %1494, %v1832_v6   ;;  %1495 = vset.pattern.permute.xlu2 %v1753_v42  ;;  %v2297_v6 = vpop.permute.xlu0 %899 }
 0x163   :  { %v2287_v59 = vpop.permute.xlu1 %458  ;;  %571 = vperm.xlu2 %1495, %v1821_v2   ;;  %1103 = vmatpush.msra.mxu2 %v990_v11  ;;  %v997_v11 = vld [vmem:[#allocation7 + $0x188] sm:$0xff] }
 0x164   :  { %v2290_v60 = vpop.permute.xlu2 %533  ;;  %vm467_vm11 = vcmp.eq.s32.totalorder %v2287_v59, %v1920_v46  ;;  %1150 = vmatpush.msra.mxu3 %v1000_v62  ;;  %v999_v59 = vld [vmem:[#allocation7 + $0x198] sm:$0xff] }
 0x165   :  { %1104 = vmatpush.msra.mxu2 %v989_v12  ;;  %vm475_vm5 = vmor %vm2252_vm1, %vm467_vm11  ;;  %v996_v12 = vld [vmem:[#allocation7 + $0x180] sm:$0xff]  ;;  %vm556_vm1 = vcmp.eq.s32.totalorder %v2290_v60, %v1920_v46 }
 0x166   :  { %1151 = vmatpush.msra.mxu3 %v999_v59 }
 0x167   :  { %1105 = vmatpush.msra.mxu2 %v988_v16 }
 0x16a   :  { %1496 = vset.pattern.permute.xlu1 %v1755_v24  ;;  %v2316_v26 = vpop.permute.xlu0 %782 }
 0x16b   :  { %611 = vperm.xlu1 %1496, %v1821_v2   ;;  %1497 = vset.pattern.permute.xlu2 %v1756_v19 }
 0x16c   :  { %v484_v0 = vpop.permute.xlu1 %483  ;;  %651 = vperm.xlu2 %1497, %v1821_v2   ;;  %v2304_v9 = vpop.permute.xlu2 %542  ;;  %v987_v2 = vld [vmem:[#allocation7 + $0x138] sm:$0xff] }
 0x16d   :  { %vm502_vm4 = vcmp.eq.s32.totalorder %v484_v0, %v1920_v46  ;;  %1106 = vmatpush.msra.mxu2 %v987_v2  ;;  %v998_v0 = vld [vmem:[#allocation7 + $0x190] sm:$0xff] }
 0x16e   :  { %vm510_vm12 = vmor %vm470_vm2, %vm502_vm4  ;;  %vm505_vm2 = vcmp.eq.s32.totalorder %v2280_v58, %v1920_v46  ;;  %1152 = vmatpush.msra.mxu3 %v998_v0 }
 0x16f   :  { %v1395_v10 = vsel %vm510_vm12, 1.0, %v1748_v14  ;;  %1107 = vmatpush.msra.mxu2 %v986_v27  ;;  %vm473_vm4 = vmor %vm2193_vm9, %vm465_vm7  ;;  %vm2620_vm9 = vnez %v2611_v28 }
 0x170   :  { %1079 = vmatmul.f32.gmra.mxu1 %v1395_v10  ;;  %vm513_vm12 = vmor %vm473_vm4, %vm505_vm2  ;;  %1153 = vmatpush.msra.mxu3 %v997_v11 }
 0x171   :  { %1108 = vmatpush.msra.mxu2 %v985_v29  ;;  %v1398_v37 = vsel %vm513_vm12, 1.0, %v1748_v14  ;;  %vm514_vm14 = vmor %vm2620_vm9, %vm506_vm15 }
 0x172   :  { %v1399_v58 = vsel %vm514_vm14, 1.0, %v1748_v14  ;;  %1154 = vmatpush.msra.mxu3 %v996_v12 }
 0x173   :  { %1499 = vset.pattern.permute.xlu1 %v1752_v39  ;;  %1109 = vmatpush.msra.mxu2 %v984_v32  ;;  %v2333_v13 = vpop.permute.xlu0 %568 }
 0x174   :  { %v490_v17 = vpop.permute.xlu1 %489  ;;  %779 = vperm.xlu1 %1499, %v1572_v20   ;;  %1500 = vset.pattern.permute.xlu2 %v1754_v57  ;;  %v2314_v1 = vpop.permute.xlu2 %548 }
 0x175   :  { %691 = vperm.xlu2 %1500, %v1572_v20   ;;  %vm504_vm10 = vcmp.eq.s32.totalorder %v490_v17, %v1920_v46  ;;  %1110 = vmatpush.msra.mxu2 %v983_v36 }
 0x176   :  { %vm512_vm8 = vmor %vm472_vm6, %vm504_vm10 }
 0x177   :  { %v1397_v18 = vsel %vm512_vm8, 1.0, %v1748_v14  ;;  %1111 = vmatpush.msra.mxu2 %v982_v23 }
 0x178   :  { %1082 = vmatmul.f32.gmra.mxu1 %v1396_v21  ;;  %v1574_v21 = vld [vmem:[#allocation2 + $0x20] sm:$0xff] }
 0x179   :  { %1112 = vmatpush.msra.mxu2 %v981_v44 }
 0x17b   :  { %1113 = vmatpush.msra.mxu2 %v980_v47  ;;  %v578_v50 = vpop.permute.xlu0 %577 }
 0x17c   :  { %v2326_v22 = vpop.permute.xlu1 %498  ;;  %1501 = vset.pattern.permute.xlu1 %v1757_v38  ;;  %vm592_vm3 = vcmp.eq.s32.totalorder %v578_v50, %v1920_v46  ;;  %v1576_v50 = vld [vmem:[#allocation2 + $0x30] sm:$0xff] }
 0x17d   :  { %819 = vperm.xlu1 %1501, %v1572_v20   ;;  %1502 = vset.pattern.permute.xlu2 %v1749_v25  ;;  %v2330_v41 = vpop.permute.xlu2 %565  ;;  %vm507_vm10 = vcmp.eq.s32.totalorder %v2326_v22, %v1920_v46 }
 0x17e   :  { %859 = vperm.xlu2 %1502, %v1572_v20   ;;  %vm515_vm6 = vmor %vm475_vm5, %vm507_vm10  ;;  %vm588_vm8 = vcmp.eq.s32.totalorder %v2330_v41, %v1920_v46 }
 0x17f   :  { %v1400_v10 = vsel %vm515_vm6, 1.0, %v1748_v14  ;;  %vm596_vm2 = vmor %vm556_vm1, %vm588_vm8 }
 0x180   :  { %1085 = vmatmul.f32.gmra.mxu1 %v1397_v18 }
 0x185   :  { %v2341_v51 = vpop.permute.xlu1 %539  ;;  %1504 = vset.pattern.permute.xlu1 %v1753_v42 }
 0x186   :  { %574 = vperm.xlu1 %1504, %v2344_v33   ;;  %1505 = vset.pattern.permute.xlu2 %v1755_v24  ;;  %v646_v40 = vpop.permute.xlu2 %645  ;;  %v686_v16 = vpop.permute.xlu0 %685 }
 0x187   :  { %614 = vperm.xlu2 %1505, %v2344_v33   ;;  %vm668_vm7 = vcmp.eq.s32.totalorder %v646_v40, %v1920_v46  ;;  %vm708_vm4 = vcmp.eq.s32.totalorder %v686_v16, %v1920_v46 }
 0x188   :  { %1088 = vmatmul.f32.gmra.mxu1 %v1398_v37 }
 0x18d   :  { %v546_v54 = vpop.permute.xlu1 %545 }
 0x18e   :  { %vm560_vm13 = vcmp.eq.s32.totalorder %v546_v54, %v1920_v46  ;;  %1506 = vset.pattern.permute.xlu1 %v1756_v19  ;;  %v2390_v27 = vpop.permute.xlu0 %697 }
 0x18f   :  { %vm2358_vm0 = vmor %vm560_vm13, %vm592_vm3  ;;  %654 = vperm.xlu1 %1506, %v2344_v33   ;;  %1507 = vset.pattern.permute.xlu2 %v1750_v31  ;;  %v774_v28 = vpop.permute.xlu2 %773 }
 0x190   :  { %1091 = vmatmul.f32.gmra.mxu1 %v1399_v58  ;;  %750 = vperm.xlu2 %1507, %v2344_v33   ;;  %vm796_vm3 = vcmp.eq.s32.totalorder %v774_v28, %v1920_v46 }
 0x195   :  { %v2371_v63 = vpop.permute.xlu1 %554 }
 0x197   :  { %1510 = vset.pattern.permute.xlu1 %v1754_v57  ;;  %v2394_v34 = vpop.permute.xlu0 %620 }
 0x198   :  { %694 = vperm.xlu1 %1510, %v2344_v33   ;;  %1094 = vmatmul.f32.gmra.mxu1 %v1400_v10  ;;  %v854_v3 = vpop.permute.xlu2 %853 }
 0x199   :  { %1511 = vset.pattern.permute.xlu2 %v1757_v38  ;;  %vm876_vm5 = vcmp.eq.s32.totalorder %v854_v3, %v1920_v46 }
 0x19a   :  { %822 = vperm.xlu2 %1511, %v2344_v33  }
 0x19e   :  { %v606_v2 = vpop.permute.xlu1 %605 }
 0x19f   :  { %vm628_vm12 = vcmp.eq.s32.totalorder %v606_v2, %v1920_v46 }
 0x1a0   :  { %vm636_vm15 = vmor %vm596_vm2, %vm628_vm12  ;;  %1512 = vset.pattern.permute.xlu1 %v1749_v25  ;;  %v2404_v41 = vpop.permute.xlu0 %828  ;;  %vm557_vm2 = vcmp.eq.s32.totalorder %v2230_v52, %v1920_v46 }
 0x1a1   :  { %862 = vperm.xlu1 %1512, %v2344_v33   ;;  %vm676_vm9 = vmor %vm636_vm15, %vm668_vm7  ;;  %v609_v60 = vpop.permute.xlu2 %608 }
 0x1a2   :  { %1513 = vset.pattern.permute.xlu2 %v1751_v35  ;;  %vm716_vm14 = vmor %vm676_vm9, %vm708_vm4  ;;  %vm589_vm4 = vcmp.eq.s32.totalorder %v2333_v13, %v1920_v46  ;;  %vm629_vm15 = vcmp.eq.s32.totalorder %v609_v60, %v1920_v46 }
 0x1a3   :  { %902 = vperm.xlu2 %1513, %v2344_v33   ;;  %v1401_v17 = vsel %vm716_vm14, 1.0, %v1748_v14  ;;  %vm597_vm12 = vmor %vm557_vm2, %vm589_vm4 }
 0x1a4   :  { %1114 = vmatmul.f32.vlgmr.msra.gmra.mxu2 %v1401_v17  ;;  %vm637_vm9 = vmor %vm597_vm12, %vm629_vm15 }
 0x1a7   :  { %v742_v20 = vpop.permute.xlu1 %741 }
 0x1a8   :  { %vm764_vm13 = vcmp.eq.s32.totalorder %v742_v20, %v1920_v46 }
 0x1a9   :  { %1515 = vset.pattern.permute.xlu1 %v1755_v24  ;;  %vm804_vm10 = vmor %vm764_vm13, %vm796_vm3  ;;  %v649_v44 = vpop.permute.xlu0 %648 }
 0x1aa   :  { %617 = vperm.xlu1 %1515, %v1574_v21   ;;  %vm669_vm14 = vcmp.eq.s32.totalorder %v649_v44, %v1920_v46 }
 0x1ab   :  { %1516 = vset.pattern.permute.xlu2 %v1756_v19  ;;  %v777_v29 = vpop.permute.xlu2 %776  ;;  %vm677_vm13 = vmor %vm637_vm9, %vm669_vm14  ;;  %vm558_vm9 = vcmp.eq.s32.totalorder %v2341_v51, %v1920_v46 }
 0x1ac   :  { %657 = vperm.xlu2 %1516, %v1574_v21   ;;  %vm797_vm3 = vcmp.eq.s32.totalorder %v777_v29, %v1920_v46 }
 0x1b0   :  { %v814_v32 = vpop.permute.xlu1 %813 }
 0x1b1   :  { %vm836_vm11 = vcmp.eq.s32.totalorder %v814_v32, %v1920_v46 }
 0x1b2   :  { %1517 = vset.pattern.permute.xlu1 %v1750_v31  ;;  %vm844_vm6 = vmor %vm804_vm10, %vm836_vm11 }
 0x1b3   :  { %753 = vperm.xlu1 %1517, %v1574_v21   ;;  %vm884_vm8 = vmor %vm844_vm6, %vm876_vm5 }
 0x1b4   :  { %1518 = vset.pattern.permute.xlu2 %v1752_v39  ;;  %v817_v36 = vpop.permute.xlu2 %816 }
 0x1b5   :  { %785 = vperm.xlu2 %1518, %v1574_v21   ;;  %vm837_vm6 = vcmp.eq.s32.totalorder %v817_v36, %v1920_v46 }
 0x1b9   :  { %v894_v22 = vpop.permute.xlu1 %893 }
 0x1ba   :  { %vm916_vm1 = vcmp.eq.s32.totalorder %v894_v22, %v1920_v46 }
 0x1bb   :  { %1519 = vset.pattern.permute.xlu1 %v1757_v38  ;;  %vm924_vm7 = vmor %vm884_vm8, %vm916_vm1  ;;  %vm877_vm8 = vcmp.eq.s32.totalorder %v2270_v56, %v1920_v46 }
 0x1bc   :  { %825 = vperm.xlu1 %1519, %v1574_v21   ;;  %v1409_v18 = vsel %vm924_vm7, 1.0, %v1748_v14 }
 0x1bd   :  { %1520 = vset.pattern.permute.xlu2 %v1749_v25  ;;  %1155 = vmatmul.f32.vlgmr.msra.gmra.mxu3 %v1409_v18  ;;  %v572_v23 = vpop.permute.xlu2 %571 }
 0x1be   :  { %865 = vperm.xlu2 %1520, %v1574_v21   ;;  %vm590_vm15 = vcmp.eq.s32.totalorder %v572_v23, %v1920_v46 }
 0x1c2   :  { %v745_v43 = vpop.permute.xlu1 %744 }
 0x1c3   :  { %vm765_vm11 = vcmp.eq.s32.totalorder %v745_v43, %v1920_v46 }
 0x1c4   :  { %1521 = vset.pattern.permute.xlu1 %v1751_v35  ;;  %vm805_vm1 = vmor %vm765_vm11, %vm797_vm3 }
 0x1c5   :  { %905 = vperm.xlu1 %1521, %v1574_v21   ;;  %vm845_vm7 = vmor %vm805_vm1, %vm837_vm6  ;;  %vm766_vm1 = vcmp.eq.s32.totalorder %v2283_v5, %v1920_v46  ;;  %v664_v21 = vpop.permute.xlu0 %663 }
 0x1c6   :  { %1522 = vset.pattern.permute.xlu2 %v1753_v42  ;;  %v652_v47 = vpop.permute.xlu2 %651  ;;  %vm885_vm4 = vmor %vm845_vm7, %vm877_vm8 }
 0x1c7   :  { %580 = vperm.xlu2 %1522, %v1575_v45   ;;  %vm670_vm14 = vcmp.eq.s32.totalorder %v652_v47, %v1920_v46  ;;  %vm598_vm3 = vmor %vm558_vm9, %vm590_vm15 }
 0x1cb   :  { %v689_v48 = vpop.permute.xlu1 %688 }
 0x1cc   :  { %vm709_vm10 = vcmp.eq.s32.totalorder %v689_v48, %v1920_v46 }
 0x1cd   :  { %1524 = vset.pattern.permute.xlu1 %v1756_v19  ;;  %vm717_vm5 = vmor %vm677_vm13, %vm709_vm10 }
 0x1ce   :  { %660 = vperm.xlu1 %1524, %v1575_v45   ;;  %v1402_v52 = vsel %vm717_vm5, 1.0, %v1748_v14 }
 0x1cf   :  { %1525 = vset.pattern.permute.xlu2 %v1750_v31  ;;  %1117 = vmatmul.f32.gmra.mxu2 %v1402_v52  ;;  %v692_v13 = vpop.permute.xlu2 %691 }
 0x1d0   :  { %756 = vperm.xlu2 %1525, %v1575_v45   ;;  %vm710_vm13 = vcmp.eq.s32.totalorder %v692_v13, %v1920_v46  ;;  %v1033_v13 = vpop.f32.mrf.mxu0 }
 0x1d4   :  { %v897_v49 = vpop.permute.xlu1 %896 }
 0x1d5   :  { %vm917_vm2 = vcmp.eq.s32.totalorder %v897_v49, %v1920_v46  ;;  %v2534_v49 = vpop.f32.mrf.mxu1 }
 0x1d6   :  { %1526 = vset.pattern.permute.xlu1 %v1752_v39  ;;  %vm925_vm12 = vmor %vm885_vm4, %vm917_vm2  ;;  %vm918_vm2 = vcmp.eq.s32.totalorder %v2297_v6, %v1920_v46 }
 0x1d7   :  { %788 = vperm.xlu1 %1526, %v1575_v45   ;;  %v1410_v33 = vsel %vm925_vm12, 1.0, %v1748_v14 }
 0x1d8   :  { %1527 = vset.pattern.permute.xlu2 %v1754_v57  ;;  %1158 = vmatmul.f32.gmra.mxu3 %v1410_v33  ;;  %v860_v37 = vpop.permute.xlu2 %859  ;;  %v1314_v33 = vld [vmem:[#allocation10 + $0x78] sm:$0xff] }
 0x1d9   :  { %700 = vperm.xlu2 %1527, %v1575_v45   ;;  %vm878_vm7 = vcmp.eq.s32.totalorder %v860_v37, %v1920_v46  ;;  %1319 = vmatpush.msrb.mxu1 %v1314_v33  ;;  %v1036_v37 = vpop.f32.mrf.mxu0 }
 0x1dd   :  { %v612_v56 = vpop.permute.xlu1 %611 }
 0x1de   :  { %vm630_vm11 = vcmp.eq.s32.totalorder %v612_v56, %v1920_v46  ;;  %v1077_v56 = vpop.f32.mrf.mxu1 }
 0x1df   :  { %vm638_vm10 = vmor %vm598_vm3, %vm630_vm11  ;;  %1530 = vset.pattern.permute.xlu1 %v1749_v25 }
 0x1e0   :  { %868 = vperm.xlu1 %1530, %v1575_v45   ;;  %vm678_vm5 = vmor %vm638_vm10, %vm670_vm14 }
 0x1e1   :  { %1531 = vset.pattern.permute.xlu2 %v1751_v35  ;;  %vm718_vm6 = vmor %vm678_vm5, %vm710_vm13  ;;  %v615_v51 = vpop.permute.xlu2 %614  ;;  %vm559_vm13 = vcmp.eq.s32.totalorder %v2304_v9, %v1920_v46 }
 0x1e2   :  { %908 = vperm.xlu2 %1531, %v1575_v45   ;;  %v1403_v40 = vsel %vm718_vm6, 1.0, %v1748_v14  ;;  %vm631_vm11 = vcmp.eq.s32.totalorder %v615_v51, %v1920_v46  ;;  %v1313_v51 = vld [vmem:[#allocation10 + $0x70] sm:$0xff] }
 0x1e3   :  { %1120 = vmatmul.f32.gmra.mxu2 %v1403_v40  ;;  %1320 = vmatpush.msrb.mxu1 %v1313_v51 }
 0x1e6   :  { %v780_v15 = vpop.permute.xlu1 %779 }
 0x1e7   :  { %vm798_vm8 = vcmp.eq.s32.totalorder %v780_v15, %v1920_v46  ;;  %v1312_v15 = vld [vmem:[#allocation10 + $0x68] sm:$0xff] }
 0x1e8   :  { %1532 = vset.pattern.permute.xlu1 %v1753_v42  ;;  %vm806_vm4 = vmor %vm766_vm1, %vm798_vm8  ;;  %1321 = vmatpush.msrb.mxu1 %v1312_v15  ;;  %v1241_v15 = vld [vmem:[#allocation8 + $0x28] sm:$0xff] }
 0x1e9   :  { %583 = vperm.xlu1 %1532, %v1576_v50  }
 0x1ea   :  { %1533 = vset.pattern.permute.xlu2 %v1755_v24  ;;  %v751_v53 = vpop.permute.xlu2 %750 }
 0x1eb   :  { %623 = vperm.xlu2 %1533, %v1576_v50  }
 0x1ef   :  { %v820_v4 = vpop.permute.xlu1 %819 }
 0x1f0   :  { %vm838_vm12 = vcmp.eq.s32.totalorder %v820_v4, %v1920_v46 }
 0x1f1   :  { %vm846_vm15 = vmor %vm806_vm4, %vm838_vm12  ;;  %1534 = vset.pattern.permute.xlu1 %v1750_v31  ;;  %v1577_v31 = vld [vmem:[#allocation2 + $0x38] sm:$0xff]  ;;  %vm767_vm4 = vcmp.eq.s32.totalorder %v751_v53, %v1920_v46  ;;  %v1080_v53 = vpop.f32.mrf.mxu1 }
 0x1f2   :  { %759 = vperm.xlu1 %1534, %v1576_v50   ;;  %vm886_vm9 = vmor %vm846_vm15, %vm878_vm7 }
 0x1f3   :  { %1535 = vset.pattern.permute.xlu2 %v1752_v39  ;;  %vm926_vm14 = vmor %vm886_vm9, %vm918_vm2  ;;  %vm799_vm2 = vcmp.eq.s32.totalorder %v2316_v26, %v1920_v46 }
 0x1f4   :  { %791 = vperm.xlu2 %1535, %v1576_v50   ;;  %v1411_v5 = vsel %vm926_vm14, 1.0, %v1748_v14  ;;  %v823_v55 = vpop.permute.xlu2 %822  ;;  %vm807_vm12 = vmor %vm767_vm4, %vm799_vm2  ;;  %vm633_vm2 = vcmp.eq.s32.totalorder %v2394_v34, %v1920_v46  ;;  %vm561_vm4 = vcmp.eq.s32.totalorder %v2314_v1, %v1920_v46 }
 0x1f5   :  { %1161 = vmatmul.f32.gmra.mxu3 %v1411_v5  ;;  %vm839_vm15 = vcmp.eq.s32.totalorder %v823_v55, %v1920_v46 }
 0x1f6   :  { %vm847_vm14 = vmor %vm807_vm12, %vm839_vm15 }
 0x1f8   :  { %v575_v54 = vpop.permute.xlu1 %574 }
 0x1f9   :  { %vm591_vm3 = vcmp.eq.s32.totalorder %v575_v54, %v1920_v46  ;;  %v1083_v55 = vpop.f32.mrf.mxu1 }
 0x1fa   :  { %1536 = vset.pattern.permute.xlu1 %v1754_v57  ;;  %vm599_vm10 = vmor %vm559_vm13, %vm591_vm3 }
 0x1fb   :  { %703 = vperm.xlu1 %1536, %v1576_v50   ;;  %vm639_vm6 = vmor %vm599_vm10, %vm631_vm11 }
 0x1fc   :  { %1537 = vset.pattern.permute.xlu2 %v1757_v38 }
 0x1fd   :  { %831 = vperm.xlu2 %1537, %v1576_v50   ;;  %v903_v6 = vpop.permute.xlu2 %902 }
 0x1fe   :  { %vm919_vm9 = vcmp.eq.s32.totalorder %v903_v6, %v1920_v46 }
 0x201   :  { %v655_v58 = vpop.permute.xlu1 %654 }
 0x202   :  { %vm671_vm5 = vcmp.eq.s32.totalorder %v655_v58, %v1920_v46 }
 0x203   :  { %1539 = vset.pattern.permute.xlu1 %v1751_v35  ;;  %vm679_vm1 = vmor %vm639_vm6, %vm671_vm5  ;;  %vm712_vm5 = vcmp.eq.s32.totalorder %v2390_v27, %v1920_v46 }
 0x204   :  { %911 = vperm.xlu1 %1539, %v1576_v50  }
 0x205   :  { %1540 = vset.pattern.permute.xlu2 %v1753_v42 }
 0x206   :  { %586 = vperm.xlu2 %1540, %v1577_v31   ;;  %v658_v30 = vpop.permute.xlu2 %657 }
 0x207   :  { %vm672_vm10 = vcmp.eq.s32.totalorder %v658_v30, %v1920_v46  ;;  %v1310_v30 = vld [vmem:[#allocation10 + $0x58] sm:$0xff] }
 0x20a   :  { %v695_v28 = vpop.permute.xlu1 %694 }
 0x20b   :  { %vm711_vm8 = vcmp.eq.s32.totalorder %v695_v28, %v1920_v46 }
 0x20c   :  { %1541 = vset.pattern.permute.xlu1 %v1755_v24  ;;  %vm719_vm7 = vmor %vm679_vm1, %vm711_vm8 }
 0x20d   :  { %626 = vperm.xlu1 %1541, %v1577_v31   ;;  %v1404_v35 = vsel %vm719_vm7, 1.0, %v1748_v14 }
 0x20e   :  { %1123 = vmatmul.f32.gmra.mxu2 %v1404_v35  ;;  %1542 = vset.pattern.permute.xlu2 %v1756_v19  ;;  %v1251_v35 = vld [vmem:[#allocation8 + $0x78] sm:$0xff] }
 0x20f   :  { %v786_v42 = vpop.permute.xlu2 %785  ;;  %666 = vperm.xlu2 %1542, %v1577_v31   ;;  %1279 = vmatpush.msrb.mxu0 %v1251_v35  ;;  %v1300_v35 = vld [vmem:[#allocation10 + $0x8] sm:$0xff] }
 0x213   :  { %v863_v24 = vpop.permute.xlu1 %862 }
 0x214   :  { %vm879_vm3 = vcmp.eq.s32.totalorder %v863_v24, %v1920_v46 }
 0x215   :  { %vm887_vm13 = vmor %vm847_vm14, %vm879_vm3  ;;  %1544 = vset.pattern.permute.xlu1 %v1752_v39 }
 0x216   :  { %794 = vperm.xlu1 %1544, %v1577_v31   ;;  %vm927_vm11 = vmor %vm887_vm13, %vm919_vm9  ;;  %vm800_vm9 = vcmp.eq.s32.totalorder %v786_v42, %v1920_v46  ;;  %v1086_v42 = vpop.f32.mrf.mxu1 }
 0x217   :  { %v1412_v9 = vsel %vm927_vm11, 1.0, %v1748_v14  ;;  %1545 = vset.pattern.permute.xlu2 %v1754_v57 }
 0x218   :  { %v866_v19 = vpop.permute.xlu2 %865  ;;  %1164 = vmatmul.f32.gmra.mxu3 %v1412_v9  ;;  %706 = vperm.xlu2 %1545, %v1577_v31   ;;  %v1309_v9 = vld [vmem:[#allocation10 + $0x50] sm:$0xff] }
 0x219   :  { %vm880_vm11 = vcmp.eq.s32.totalorder %v866_v19, %v1920_v46  ;;  %v1250_v19 = vld [vmem:[#allocation8 + $0x70] sm:$0xff] }
 0x21a   :  { %1280 = vmatpush.msrb.mxu0 %v1250_v19 }
 0x21c   :  { %v618_v26 = vpop.permute.xlu1 %617 }
 0x21d   :  { %vm632_vm6 = vcmp.eq.s32.totalorder %v618_v26, %v1920_v46  ;;  %v1249_v26 = vld [vmem:[#allocation8 + $0x68] sm:$0xff] }
 0x21e   :  { %vm640_vm1 = vmor %vm2358_vm0, %vm632_vm6  ;;  %1546 = vset.pattern.permute.xlu1 %v1757_v38  ;;  %v1307_v38 = vld [vmem:[#allocation10 + $0x40] sm:$0xff]  ;;  %1281 = vmatpush.msrb.mxu0 %v1249_v26 }
 0x21f   :  { %834 = vperm.xlu1 %1546, %v1577_v31   ;;  %vm680_vm8 = vmor %vm640_vm1, %vm672_vm10  ;;  %v1236_v26 = vld [vmem:[#allocation8] sm:$0xff] }
 0x220   :  { %vm720_vm7 = vmor %vm680_vm8, %vm712_vm5  ;;  %1547 = vset.pattern.permute.xlu2 %v1749_v25 }
 0x221   :  { %v581_v39 = vpop.permute.xlu2 %580  ;;  %v1405_v57 = vsel %vm720_vm7, 1.0, %v1748_v14  ;;  %874 = vperm.xlu2 %1547, %v1577_v31   ;;  %v1311_v31 = vld [vmem:[#allocation10 + $0x60] sm:$0xff] }
 0x222   :  { %vm593_vm12 = vcmp.eq.s32.totalorder %v581_v39, %v1920_v46  ;;  %1126 = vmatmul.f32.gmra.mxu2 %v1405_v57  ;;  %1322 = vmatpush.msrb.mxu1 %v1311_v31  ;;  %v1308_v39 = vld [vmem:[#allocation10 + $0x48] sm:$0xff]  ;;  %v1248_v57 = vld [vmem:[#allocation8 + $0x60] sm:$0xff]  ;;  %v1239_v31 = vld [vmem:[#allocation8 + $0x18] sm:$0xff] }
 0x223   :  { %vm601_vm0 = vmor %vm561_vm4, %vm593_vm12  ;;  %1282 = vmatpush.msrb.mxu0 %v1248_v57 }
 0x224   :  { %vm2486_vm15 = vmor %vm601_vm0, %vm633_vm2  ;;  %1323 = vmatpush.msrb.mxu1 %v1310_v30 }
 0x225   :  { %v754_v61 = vpop.permute.xlu1 %753 }
 0x226   :  { %vm768_vm14 = vcmp.eq.s32.totalorder %v754_v61, %v1920_v46  ;;  %1324 = vmatpush.msrb.mxu1 %v1309_v9  ;;  %v1299_v9 = vld [vmem:[#allocation10] sm:$0xff] }
 0x227   :  { %vm808_vm13 = vmor %vm768_vm14, %vm800_vm9  ;;  %vm841_vm9 = vcmp.eq.s32.totalorder %v2404_v41, %v1920_v46  ;;  %v2536_v40 = vpop.f32.mrf.mxu2 }
 0x228   :  { %1325 = vmatpush.msrb.mxu1 %v1308_v39 }
 0x22a   :  { %v757_v7 = vpop.permute.xlu2 %756  ;;  %1326 = vmatpush.msrb.mxu1 %v1307_v38 }
 0x22b   :  { %vm769_vm0 = vcmp.eq.s32.totalorder %v757_v7, %v1920_v46 }
 0x22e   :  { %v826_v25 = vpop.permute.xlu1 %825 }
 0x22f   :  { %vm840_vm3 = vcmp.eq.s32.totalorder %v826_v25, %v1920_v46  ;;  %v1306_v25 = vld [vmem:[#allocation10 + $0x38] sm:$0xff] }
 0x230   :  { %vm848_vm10 = vmor %vm808_vm13, %vm840_vm3  ;;  %1327 = vmatpush.msrb.mxu1 %v1306_v25 }
 0x231   :  { %vm888_vm6 = vmor %vm848_vm10, %vm880_vm11 }
 0x233   :  { %v701_v62 = vpop.permute.xlu2 %700 }
 0x234   :  { %vm713_vm8 = vcmp.eq.s32.totalorder %v701_v62, %v1920_v46 }
 0x237   :  { %v906_v1 = vpop.permute.xlu1 %905 }
 0x238   :  { %vm920_vm5 = vcmp.eq.s32.totalorder %v906_v1, %v1920_v46  ;;  %v1305_v1 = vld [vmem:[#allocation10 + $0x30] sm:$0xff] }
 0x239   :  { %vm928_vm1 = vmor %vm888_vm6, %vm920_vm5  ;;  %vm562_vm6 = vcmp.eq.s32.totalorder %v2259_v8, %v1920_v46  ;;  %v872_v8 = vpop.permute.xlu0 %871  ;;  %1328 = vmatpush.msrb.mxu1 %v1305_v1 }
 0x23a   :  { %v1413_v59 = vsel %vm928_vm1, 1.0, %v1748_v14 }
 0x23b   :  { %1167 = vmatmul.f32.gmra.mxu3 %v1413_v59  ;;  %v1089_v59 = vpop.f32.mrf.mxu1 }
 0x23c   :  { %v909_v10 = vpop.permute.xlu2 %908 }
 0x23d   :  { %vm921_vm3 = vcmp.eq.s32.totalorder %v909_v10, %v1920_v46  ;;  %v2555_v10 = vld [vmem:[%s2586_s3] ss:$0 sm:$0xff] }
 0x240   :  { %v661_v0 = vpop.permute.xlu1 %660  ;;  %v2538_v50 = vpop.f32.mrf.mxu3 }
 0x241   :  { %vm673_vm7 = vcmp.eq.s32.totalorder %v661_v0, %v1920_v46  ;;  %v763_v44 = vpop.permute.xlu0 %762  ;;  %v1304_v0 = vld [vmem:[#allocation10 + $0x28] sm:$0xff] }
 0x242   :  { %vm681_vm2 = vmor %vm2486_vm15, %vm673_vm7  ;;  %1329 = vmatpush.msrb.mxu1 %v1304_v0 }
 0x243   :  { %vm721_vm4 = vmor %vm681_vm2, %vm713_vm8  ;;  %vm674_vm2 = vcmp.eq.s32.totalorder %v664_v21, %v1920_v46  ;;  %v1244_v21 = vld [vmem:[#allocation8 + $0x40] sm:$0xff] }
 0x244   :  { %v1406_v3 = vsel %vm721_vm4, 1.0, %v1748_v14 }
 0x245   :  { %1129 = vmatmul.f32.gmra.mxu2 %v1406_v3  ;;  %v624_v12 = vpop.permute.xlu2 %623  ;;  %v1247_v3 = vld [vmem:[#allocation8 + $0x58] sm:$0xff] }
 0x246   :  { %vm634_vm1 = vcmp.eq.s32.totalorder %v624_v12, %v1920_v46  ;;  %1283 = vmatpush.msrb.mxu0 %v1247_v3 }
 0x249   :  { %v789_v11 = vpop.permute.xlu1 %788 }
 0x24a   :  { %vm801_vm12 = vcmp.eq.s32.totalorder %v789_v11, %v1920_v46  ;;  %v1246_v11 = vld [vmem:[#allocation8 + $0x50] sm:$0xff] }
 0x24b   :  { %vm809_vm14 = vmor %vm769_vm0, %vm801_vm12  ;;  %1284 = vmatpush.msrb.mxu0 %v1246_v11 }
 0x24c   :  { %vm849_vm13 = vmor %vm809_vm14, %vm841_vm9 }
 0x24e   :  { %v792_v60 = vpop.permute.xlu2 %791 }
 0x24f   :  { %vm802_vm4 = vcmp.eq.s32.totalorder %v792_v60, %v1920_v46  ;;  %v1037_v60 = vadd.f32 %v2555_v10, %v1036_v37 }
 0x252   :  { %v869_v16 = vpop.permute.xlu1 %868  ;;  %v2540_v4 = vpop.f32.mrf.mxu2 }
 0x253   :  { %vm881_vm15 = vcmp.eq.s32.totalorder %v869_v16, %v1920_v46  ;;  %v1034_v16 = vadd.f32 %v2555_v10, %v1033_v13 }
 0x254   :  { %vm889_vm11 = vmor %vm849_vm13, %vm881_vm15 }
 0x255   :  { %vm929_vm10 = vmor %vm889_vm11, %vm921_vm3  ;;  %vm882_vm11 = vcmp.eq.s32.totalorder %v872_v8, %v1920_v46 }
 0x256   :  { %v1414_v2 = vsel %vm929_vm10, 1.0, %v1748_v14 }
 0x257   :  { %1170 = vmatmul.f32.gmra.mxu3 %v1414_v2  ;;  %v832_v20 = vpop.permute.xlu2 %831  ;;  %v1245_v2 = vld [vmem:[#allocation8 + $0x48] sm:$0xff] }
 0x258   :  { %vm842_vm3 = vcmp.eq.s32.totalorder %v832_v20, %v1920_v46  ;;  %1285 = vmatpush.msrb.mxu0 %v1245_v2 }
 0x25a   :  { %1286 = vmatpush.msrb.mxu0 %v1244_v21 }
 0x25b   :  { %v584_v17 = vpop.permute.xlu1 %583 }
 0x25c   :  { %vm594_vm5 = vcmp.eq.s32.totalorder %v584_v17, %v1920_v46 }
 0x25d   :  { %vm602_vm8 = vmor %vm562_vm6, %vm594_vm5 }
 0x25e   :  { %vm642_vm7 = vmor %vm602_vm8, %vm634_vm1  ;;  %vm563_vm8 = vcmp.eq.s32.totalorder %v2371_v63, %v1920_v46  ;;  %v915_v63 = vpop.permute.xlu0 %914 }
 0x25f   :  { %vm682_vm12 = vmor %vm642_vm7, %vm674_vm2 }
 0x260   :  { %v587_v29 = vpop.permute.xlu2 %586 }
 0x261   :  { %vm595_vm1 = vcmp.eq.s32.totalorder %v587_v29, %v1920_v46 }
 0x262   :  { %vm603_vm2 = vmor %vm563_vm8, %vm595_vm1 }
 0x264   :  { %v760_v27 = vpop.permute.xlu1 %759 }
 0x265   :  { %vm770_vm0 = vcmp.eq.s32.totalorder %v760_v27, %v1920_v46  ;;  %v1075_v27 = vadd.f32 %v2534_v49, %v1034_v16 }
 0x266   :  { %vm810_vm13 = vmor %vm770_vm0, %vm802_vm4  ;;  %v2544_v54 = vpop.f32.mrf.mxu2 }
 0x267   :  { %vm850_vm15 = vmor %vm810_vm13, %vm842_vm3  ;;  %vm771_vm13 = vcmp.eq.s32.totalorder %v763_v44, %v1920_v46 }
 0x268   :  { %vm890_vm10 = vmor %vm850_vm15, %vm882_vm11 }
 0x269   :  { %v667_v36 = vpop.permute.xlu2 %666 }
 0x26a   :  { %vm675_vm7 = vcmp.eq.s32.totalorder %v667_v36, %v1920_v46  ;;  %v1116_v36 = vadd.f32 %v2536_v40, %v1075_v27 }
 0x26d   :  { %v704_v32 = vpop.permute.xlu1 %703 }
 0x26e   :  { %vm714_vm9 = vcmp.eq.s32.totalorder %v704_v32, %v1920_v46  ;;  %v1078_v32 = vadd.f32 %v1077_v56, %v1037_v60 }
 0x26f   :  { %vm722_vm14 = vmor %vm682_vm12, %vm714_vm9 }
 0x270   :  { %v1407_v34 = vsel %vm722_vm14, 1.0, %v1748_v14  ;;  %v1119_v44 = vadd.f32 %v2540_v4, %v1078_v32 }
 0x271   :  { %1132 = vmatmul.f32.gmra.mxu2 %v1407_v34 }
 0x272   :  { %v707_v18 = vpop.permute.xlu2 %706 }
 0x273   :  { %vm715_vm12 = vcmp.eq.s32.totalorder %v707_v18, %v1920_v46 }
 0x276   :  { %v912_v22 = vpop.permute.xlu1 %911 }
 0x277   :  { %vm922_vm5 = vcmp.eq.s32.totalorder %v912_v22, %v1920_v46  ;;  %v1243_v22 = vld [vmem:[#allocation8 + $0x38] sm:$0xff] }
 0x278   :  { %vm930_vm6 = vmor %vm890_vm10, %vm922_vm5  ;;  %vm923_vm5 = vcmp.eq.s32.totalorder %v915_v63, %v1920_v46  ;;  %1287 = vmatpush.msrb.mxu0 %v1243_v22  ;;  %v1157_v63 = vadd.f32 %v2538_v50, %v1116_v36 }
 0x279   :  { %v1415_v41 = vsel %vm930_vm6, 1.0, %v1748_v14 }
 0x27a   :  { %1173 = vmatmul.f32.gmra.mxu3 %v1415_v41  ;;  %1552 = vtanh.f32 %v1157_v63 }
 0x27b   :  { %v875_v47 = vpop.permute.xlu2 %874 }
 0x27c   :  { %vm883_vm15 = vcmp.eq.s32.totalorder %v875_v47, %v1920_v46 }
 0x27f   :  { %v627_v23 = vpop.permute.xlu1 %626 }
 0x280   :  { %vm635_vm4 = vcmp.eq.s32.totalorder %v627_v23, %v1920_v46 }
 0x281   :  { %vm643_vm0 = vmor %vm603_vm2, %vm635_vm4  ;;  %vm1266_vm2 = vcmask 1042434   ;;  %vm1268_vm4 = vcmask 1043459  }
 0x282   :  { %vm683_vm9 = vmor %vm643_vm0, %vm675_vm7  ;;  %vm1264_vm7 = vcmask 1041409   ;;  %vm1272_vm0 = vcmask 1045509  }
 0x283   :  { %vm723_vm14 = vmor %vm683_vm9, %vm715_vm12  ;;  %vm1270_vm12 = vcmask 1044484   ;;  %vm1274_vm9 = vcmask 1046534  }
 0x284   :  { %v1408_v43 = vsel %vm723_vm14, 1.0, %v1748_v14  ;;  %vm1276_vm14 = vcmask 1047559  }
 0x285   :  { %1135 = vmatmul.f32.gmra.mxu2 %v1408_v43  ;;  %v1092_v43 = vpop.f32.mrf.mxu1 }
 0x288   :  { %v795_v45 = vpop.permute.xlu1 %794 }
 0x289   :  { %vm803_vm3 = vcmp.eq.s32.totalorder %v795_v45, %v1920_v46 }
 0x28a   :  { %vm811_vm11 = vmor %vm771_vm13, %vm803_vm3 }
 0x291   :  { %v835_v48 = vpop.permute.xlu1 %834  ;;  %v2548_v58 = vpop.f32.mrf.mxu2 }
 0x292   :  { %vm843_vm10 = vcmp.eq.s32.totalorder %v835_v48, %v1920_v46  ;;  %v1039_v46 = vpop.f32.mrf.mxu0 }
 0x293   :  { %vm851_vm6 = vmor %vm811_vm11, %vm843_vm10  ;;  %v1040_v20 = vadd.f32 %v2555_v10, %v1039_v46 }
 0x294   :  { %vm891_vm1 = vmor %vm851_vm6, %vm883_vm15 }
 0x295   :  { %vm931_vm8 = vmor %vm891_vm1, %vm923_vm5  ;;  %v1081_v8 = vadd.f32 %v1080_v53, %v1040_v20 }
 0x296   :  { %v1416_v52 = vsel %vm931_vm8, 1.0, %v1748_v14  ;;  %v2542_v14 = vpop.f32.mrf.mxu3 }
 0x297   :  { %1176 = vmatmul.f32.gmra.mxu3 %v1416_v52  ;;  %v1122_v48 = vadd.f32 %v2544_v54, %v1081_v8  ;;  %v1242_v52 = vld [vmem:[#allocation8 + $0x30] sm:$0xff]  ;;  %v1160_v49 = vadd.f32 %v2542_v14, %v1119_v44  ;;  %v1302_v54 = vld [vmem:[#allocation10 + $0x18] sm:$0xff] }
 0x298   :  { %1288 = vmatpush.msrb.mxu0 %v1242_v52 }
 0x299   :  { %1554 = vtanh.f32 %v1160_v49 }
 0x29a   :  { %v1042_v5 = vpop.f32.mrf.mxu0  ;;  %1289 = vmatpush.msrb.mxu0 %v1241_v15 }
 0x29b   :  { %v1043_v29 = vadd.f32 %v2555_v10, %v1042_v5 }
 0x29d   :  { %v1084_v23 = vadd.f32 %v1083_v55, %v1043_v29  ;;  %v1303_v55 = vld [vmem:[#allocation10 + $0x20] sm:$0xff] }
 0x29e   :  { %v2546_v6 = vpop.f32.mrf.mxu3  ;;  %1330 = vmatpush.msrb.mxu1 %v1303_v55 }
 0x29f   :  { %v1125_v33 = vadd.f32 %v2548_v58, %v1084_v23  ;;  %v1163_v40 = vadd.f32 %v2546_v6, %v1122_v48  ;;  %v1240_v58 = vld [vmem:[#allocation8 + $0x20] sm:$0xff]  ;;  %v1301_v6 = vld [vmem:[#allocation10 + $0x10] sm:$0xff] }
 0x2a0   :  { %1290 = vmatpush.msrb.mxu0 %v1240_v58  ;;  %1331 = vmatpush.msrb.mxu1 %v1302_v54 }
 0x2a1   :  { %1556 = vtanh.f32 %v1163_v40 }
 0x2a2   :  { %v1045_v28 = vpop.f32.mrf.mxu0  ;;  %1291 = vmatpush.msrb.mxu0 %v1239_v31  ;;  %1332 = vmatpush.msrb.mxu1 %v1301_v6 }
 0x2a3   :  { %v1046_v34 = vadd.f32 %v2555_v10, %v1045_v28  ;;  %v1238_v28 = vld [vmem:[#allocation8 + $0x10] sm:$0xff] }
 0x2a4   :  { %1292 = vmatpush.msrb.mxu0 %v1238_v28  ;;  %1333 = vmatpush.msrb.mxu1 %v1300_v35 }
 0x2a5   :  { %v1127_v61 = vpop.f32.mrf.mxu2  ;;  %v1087_v47 = vadd.f32 %v1086_v42, %v1046_v34  ;;  %v1237_v42 = vld [vmem:[#allocation8 + $0x8] sm:$0xff] }
 0x2a6   :  { %v2550_v24 = vpop.f32.mrf.mxu3  ;;  %1293 = vmatpush.msrb.mxu0 %v1237_v42  ;;  %1334 = vmatpush.msrb.mxu1 %v1299_v9 }
 0x2a7   :  { %v1128_v51 = vadd.f32 %v1127_v61, %v1087_v47  ;;  %v1166_v46 = vadd.f32 %v2550_v24, %v1125_v33  ;;  %v1553_v24 = vpop.eup %1552 }
 0x2a8   :  { %v1555_v19 = vpop.eup %1554  ;;  %1294 = vmatpush.msrb.mxu0 %v1236_v26  ;;  %v1188_v0 = vrot.slane %v1553_v24, 4 }
 0x2a9   :  { %1558 = vtanh.f32 %v1166_v46  ;;  %v1557_v39 = vpop.eup %1556  ;;  %v1194_v25 = vrot.slane %v1555_v19, 4 }
 0x2aa   :  { %v1048_v62 = vpop.f32.mrf.mxu0  ;;  %v1200_v1 = vrot.slane %v1557_v39, 4  ;;  %v1189_v21 = vmax.f32 %v1553_v24, %v1188_v0 }
 0x2ab   :  { %v1049_v41 = vadd.f32 %v2555_v10, %v1048_v62  ;;  %v1195_v16 = vmax.f32 %v1555_v19, %v1194_v25 }
 0x2ac   :  { %v1201_v20 = vmax.f32 %v1557_v39, %v1200_v1 }
 0x2ad   :  { %v1090_v13 = vadd.f32 %v1089_v59, %v1049_v41  ;;  %v1095_v59 = vpop.f32.mrf.mxu1  ;;  %v1196_v8 = vrot.slane %v1195_v16, 2 }
 0x2ae   :  { %v1202_v41 = vrot.slane %v1201_v20, 2 }
 0x2af   :  { %v1559_v57 = vpop.eup %1558 }
 0x2b0   :  { %v1206_v3 = vrot.slane %v1559_v57, 4  ;;  %v1203_v63 = vmax.f32 %v1201_v20, %v1202_v41 }
 0x2b2   :  { %v1051_v18 = vpop.f32.mrf.mxu0  ;;  %v1207_v29 = vmax.f32 %v1559_v57, %v1206_v3  ;;  %v1204_v40 = vrot.slane %v1203_v63, 1 }
 0x2b3   :  { %v1052_v45 = vadd.f32 %v2555_v10, %v1051_v18 }
 0x2b4   :  { %v1208_v44 = vrot.slane %v1207_v29, 2  ;;  %v1205_v54 = vmax.f32 %v1203_v63, %v1204_v40 }
 0x2b5   :  { %v1093_v56 = vadd.f32 %v1092_v43, %v1052_v45  ;;  %v1190_v43 = vrot.slane %v1189_v21, 2  ;;  %v1197_v45 = vmax.f32 %v1195_v16, %v1196_v8  ;;  %v1550_v16 = vld [vmem:[%s2588_s5] ss:$0 sm:$0xff]  ;;  %s1758_s5 = smov [#allocation11]  }
 0x2b7   :  { %v1191_v52 = vmax.f32 %v1189_v21, %v1190_v43  ;;  %v1198_v33 = vrot.slane %v1197_v45, 1 }
 0x2b9   :  { %v1192_v15 = vrot.slane %v1191_v52, 1 }
 0x2ba   :  { %v1054_v61 = vpop.f32.mrf.mxu0 }
 0x2bb   :  { %v1055_v11 = vadd.f32 %v2555_v10, %v1054_v61  ;;  %v1193_v58 = vmax.f32 %v1191_v52, %v1192_v15 }
 0x2be   :  { %v1168_v7 = vpop.f32.mrf.mxu3 }
 0x2bf   :  { %v1169_v50 = vadd.f32 %v1168_v7, %v1128_v51 }
 0x2c1   :  { %1560 = vtanh.f32 %v1169_v50  ;;  %v1199_v50 = vmax.f32 %v1197_v45, %v1198_v33 }
 0x2c3   :  { %v1265_v42 = vsel %vm1264_vm7, %v1199_v50, %v1193_v58 }
 0x2c4   :  { %v1267_v9 = vsel %vm1266_vm2, %v1205_v54, %v1265_v42 }
 0x2c7   :  { %v1561_v38 = vpop.eup %1560 }
 0x2c8   :  { %v1130_v12 = vpop.f32.mrf.mxu2 }
 0x2c9   :  { %v1131_v53 = vadd.f32 %v1130_v12, %v1090_v13  ;;  %v1212_v12 = vrot.slane %v1561_v38, 4  ;;  %v1209_v13 = vmax.f32 %v1207_v29, %v1208_v44 }
 0x2cb   :  { %v1213_v32 = vmax.f32 %v1561_v38, %v1212_v12  ;;  %v1210_v46 = vrot.slane %v1209_v13, 1 }
 0x2cd   :  { %v1214_v10 = vrot.slane %v1213_v32, 2  ;;  %v1211_v31 = vmax.f32 %v1209_v13, %v1210_v46 }
 0x2cf   :  { %v1215_v49 = vmax.f32 %v1213_v32, %v1214_v10  ;;  %v1269_v26 = vsel %vm1268_vm4, %v1211_v31, %v1267_v9 }
 0x2da   :  { %v1171_v17 = vpop.f32.mrf.mxu3 }
 0x2db   :  { %v1172_v14 = vadd.f32 %v1171_v17, %v1131_v53  ;;  %v1096_v17 = vadd.f32 %v1095_v59, %v1055_v11 }
 0x2dd   :  { %1562 = vtanh.f32 %v1172_v14 }
 0x2e3   :  { %v1563_v7 = vpop.eup %1562 }
 0x2e4   :  { %v1218_v2 = vrot.slane %v1563_v7, 4 }
 0x2e6   :  { %v1219_v36 = vmax.f32 %v1563_v7, %v1218_v2  ;;  %v1551_v7 = vld [vmem:[%s2590_s7] ss:$0 sm:$0xff]  ;;  %s1371_s7 = sshll.u32 %s1758_s5, 4  ;;  %s1372_s7 = int_to_ptr.vmem [resolvable:$true] %s1371_s7 }
 0x2e8   :  { %v1220_v47 = vrot.slane %v1219_v36, 2 }
 0x2f4   :  { %v1133_v37 = vpop.f32.mrf.mxu2 }
 0x2f5   :  { %v1134_v5 = vadd.f32 %v1133_v37, %v1093_v56  ;;  %v1221_v37 = vmax.f32 %v1219_v36, %v1220_v47 }
 0x2fd   :  { %v1174_v4 = vpop.f32.mrf.mxu3 }
 0x2fe   :  { %v1175_v30 = vadd.f32 %v1174_v4, %v1134_v5  ;;  %v1216_v4 = vrot.slane %v1215_v49, 1  ;;  %v1222_v5 = vrot.slane %v1221_v37, 1 }
 0x300   :  { %1564 = vtanh.f32 %v1175_v30  ;;  %v1217_v6 = vmax.f32 %v1215_v49, %v1216_v4  ;;  %v1223_v28 = vmax.f32 %v1221_v37, %v1222_v5 }
 0x302   :  { %v1271_v39 = vsel %vm1270_vm12, %v1217_v6, %v1269_v26 }
 0x303   :  { %v1273_v38 = vsel %vm1272_vm0, %v1223_v28, %v1271_v39 }
 0x306   :  { %v1565_v62 = vpop.eup %1564 }
 0x307   :  { %v1224_v27 = vrot.slane %v1565_v62, 4 }
 0x308   :  { %v1136_v60 = vpop.f32.mrf.mxu2 }
 0x309   :  { %v1137_v34 = vadd.f32 %v1136_v60, %v1096_v17  ;;  %v1225_v18 = vmax.f32 %v1565_v62, %v1224_v27 }
 0x30b   :  { %v1226_v48 = vrot.slane %v1225_v18, 2 }
 0x30d   :  { %v1227_v51 = vmax.f32 %v1225_v18, %v1226_v48 }
 0x30f   :  { %v1228_v14 = vrot.slane %v1227_v51, 1 }
 0x311   :  { %v1229_v24 = vmax.f32 %v1227_v51, %v1228_v14 }
 0x313   :  { %v1275_v61 = vsel %vm1274_vm9, %v1229_v24, %v1273_v38 }
 0x31a   :  { %v1177_v22 = vpop.f32.mrf.mxu3 }
 0x31b   :  { %v1178_v23 = vadd.f32 %v1177_v22, %v1137_v34 }
 0x31d   :  { %1566 = vtanh.f32 %v1178_v23  ;;  %v1363_v23 = vld [vmem:[#allocation5] sm:$0xff] }
 0x323   :  { %v1567_v56 = vpop.eup %1566 }
 0x324   :  { %v1230_v53 = vrot.slane %v1567_v56, 4 }
 0x326   :  { %v1231_v55 = vmax.f32 %v1567_v56, %v1230_v53 }
 0x328   :  { %v1232_v30 = vrot.slane %v1231_v55, 2 }
 0x32a   :  { %v1233_v35 = vmax.f32 %v1231_v55, %v1232_v30 }
 0x32c   :  { %v1234_v19 = vrot.slane %v1233_v35, 1 }
 0x32e   :  { %v1235_v57 = vmax.f32 %v1233_v35, %v1234_v19 }
 0x330   :  { %v1277_v25 = vsel %vm1276_vm14, %v1235_v57, %v1275_v61 }
 0x331   :  { %1295 = vmatmul.f32.vlgmr.msrb.gmra.mxu0 %v1277_v25  ;;  %1335 = vmatmul.f32.vlgmr.msrb.gmra.mxu1 %v1277_v25 }
 0x3ae   :  { %v1336_v1 = vpop.f32.mrf.mxu1  ;;  %v1296_v60 = vpop.f32.mrf.mxu0 }
 0x3af   :  { %v1337_v62 = vadd.f32 %v1551_v7, %v1336_v1  ;;  %v1297_v21 = vadd.f32 %v1550_v16, %v1296_v60 }
 0x3b1   :  { %v1417_v59 = vmul.f32 -1.442695, %v1337_v62  ;;  %v1339_v36 = vmax.f32 %v1297_v21, 0.0 }
 0x3b3   :  { %1568 = vpow2.f32 %v1417_v59 }
 0x3b9   :  { %v1569_v0 = vpop.eup %1568 }
 0x3ba   :  { %v1343_v3 = vadd.f32 1.0, %v1569_v0 }
 0x3bc   :  { %1570 = vrcp.f32 %v1343_v3  ;;  %v1355_v17 = vand.u32 2147483648, %v1343_v3  ;;  %v1353_v27 = vand.u32 2147483647, %v1343_v3  ;;  %vm1349_vm13 = vweird.f32 %v1343_v3 }
 0x3be   :  { %v1356_v32 = vor.u32 1.1754944e-38, %v1355_v17  ;;  %vm1354_vm11 = vcmp.eq.f32.partialorder %v1353_v27, 8.507059e+37 }
 0x3c2   :  { %v1571_v11 = vpop.eup %1570 }
 0x3c3   :  { %v1345_v12 = vmul.f32 %v1571_v11, %v1343_v3  ;;  %vm1350_vm3 = vweird.f32 %v1571_v11 }
 0x3c4   :  { %vm1351_vm15 = vmor %vm1349_vm13, %vm1350_vm3 }
 0x3c5   :  { %v1346_v2 = vsub.f32 1.0, %v1345_v12 }
 0x3c7   :  { %v1347_v20 = vmul.f32 %v1571_v11, %v1346_v2 }
 0x3c9   :  { %v1348_v29 = vadd.f32 %v1571_v11, %v1347_v20 }
 0x3cb   :  { %v1352_v34 = vsel %vm1351_vm15, %v1571_v11, %v1348_v29 }
 0x3cc   :  { %v1357_v8 = vsel %vm1354_vm11, %v1356_v32, %v1352_v34 }
 0x3cd   :  { %v1360_v22 = vsub.f32 1.0, %v1357_v8  ;;  %v1359_v41 = vmul.f32 %v1357_v8, %v1339_v36 }
 0x3cf   :  { %v1361_v18 = vmul.f32 %v1360_v22, %v1277_v25 }
 0x3d1   :  { %v1362_v43 = vadd.f32 %v1361_v18, %v1359_v41 }
 0x3d3   :  { %v1364_v44 = vmul.f32 %v1363_v23, %v1362_v43 }
 0x3d5   :  { %1365 = vst [vmem:[#allocation11] sm:$0xff] %v1364_v44 }
 0x3d6   :  { %1376 = dma.vmem_to_hbm [thread:$0]  %s1372_s7, 128, %s1374_s12, [#allocation4]  }
 0x3d7   :  { %1728 = dma.done.wait [#allocation4], 128  }
 0x3d8   :  { %1729 = vsyncadd [#allocation4], 4294967168 }
 0x3d9   :  { %1381 = vsyncpa [#allocation3], 1 }
 0x3da   :  { %1382 = vsyncpa [#allocation6], 1 }
 0x3db   :  { %1383 = vsyncpa [#allocation9], 1 }
 0x3dc   :  { %1384 = vsyncpa [#allocation4], 1 }

</bundles_post_ra>
